<compile_context>
chip_gen: v7x
topology: tpu7x:2x2x1
jax: 0.10.0
libtpu: 0.0.40
codegen_flags: <defaults>
</compile_context>

<pallas_src>
import functools

import jax
import jax.numpy as jnp
from jax import lax
from jax.experimental import pallas as pl
from jax.experimental.pallas import tpu as pltpu

_VMEM_LIMIT = 48 * 1024 * 1024


def _round_up(x, m):
    return (x + m - 1) // m * m


def _cparams(dims):
    return pltpu.CompilerParams(dimension_semantics=dims, vmem_limit_bytes=_VMEM_LIMIT)


# ----------------------------- fused matmul + BN + act (+ residual) -----------------------------

def _matmul_kernel(a_ref, b_ref, scale_ref, shift_ref, *rest, act, has_res):
    if has_res:
        res_ref, o_ref, acc_ref = rest
    else:
        o_ref, acc_ref = rest

    @pl.when(pl.program_id(2) == 0)
    def _init():
        acc_ref[...] = jnp.zeros_like(acc_ref)

    acc_ref[...] += jnp.dot(a_ref[...], b_ref[...], preferred_element_type=jnp.float32)

    @pl.when(pl.program_id(2) == pl.num_programs(2) - 1)
    def _fin():
        y = acc_ref[...] * scale_ref[...] + shift_ref[...]
        if has_res:
            y = y + res_ref[...].astype(jnp.float32)
        if act == "relu":
            y = jnp.maximum(y, 0.0)
        o_ref[...] = y.astype(o_ref.dtype)


def _weight_spec(shape, index_map, multibuffer):
    # Triple-buffer the streamed weight tiles when the K-loop is long.
    if multibuffer and hasattr(pl, "Buffered"):
        try:
            return pl.BlockSpec(shape, index_map, pipeline_mode=pl.Buffered(3))
        except TypeError:
            pass
    return pl.BlockSpec(shape, index_map)


def matmul_bn_act(a, b, scale, shift, act="none", residual=None, out_dtype=jnp.bfloat16):
    """(M,K)@(K,N) on the MXU (bf16 operands, f32 acc) then *scale[N]+shift[N] (folded BN),
    optional fused residual add and ReLU."""
    M, K = a.shape
    K2, N = b.shape
    assert K == K2
    tm = 512 if M >= 512 else _round_up(M, 16)      # bf16 sublane tile is (16,128)
    if N >= 1024:
        tn = 1024
    elif N >= 512:
        tn = 512
    else:
        tn = _round_up(N, 128)
    if K >= 1024:
        tk = 512
    elif K > 256:
        tk = 256
    else:
        tk = _round_up(K, 128)
    Mp, Kp, Np = _round_up(M, tm), _round_up(K, tk), _round_up(N, tn)

    a_p = a.astype(jnp.bfloat16)
    if (Mp, Kp) != (M, K):
        a_p = jnp.pad(a_p, ((0, Mp - M), (0, Kp - K)))
    b_p = b.astype(jnp.bfloat16)
    if (Kp, Np) != (K, N):
        b_p = jnp.pad(b_p, ((0, Kp - K), (0, Np - N)))
    scale_p = (scale if Np == N else jnp.pad(scale, (0, Np - N))).reshape(1, Np)
    shift_p = (shift if Np == N else jnp.pad(shift, (0, Np - N))).reshape(1, Np)

    grid = (Mp // tm, Np // tn, Kp // tk)
    nk = grid[2]

    in_specs = [
        pl.BlockSpec((tm, tk), lambda i, j, k: (i, k)),
        _weight_spec((tk, tn), lambda i, j, k: (k, j), multibuffer=(nk >= 3)),
        pl.BlockSpec((1, tn), lambda i, j, k: (0, j)),
        pl.BlockSpec((1, tn), lambda i, j, k: (0, j)),
    ]
    operands = [a_p, b_p, scale_p, shift_p]
    has_res = residual is not None
    if has_res:
        r_p = residual.astype(jnp.bfloat16)
        if (Mp, Np) != (M, N):
            r_p = jnp.pad(r_p, ((0, Mp - M), (0, Np - N)))
        in_specs.append(pl.BlockSpec((tm, tn), lambda i, j, k: (i, j)))
        operands.append(r_p)

    out = pl.pallas_call(
        functools.partial(_matmul_kernel, act=act, has_res=has_res),
        out_shape=jax.ShapeDtypeStruct((Mp, Np), out_dtype),
        grid_spec=pltpu.PrefetchScalarGridSpec(
            num_scalar_prefetch=0,
            grid=grid,
            in_specs=in_specs,
            out_specs=pl.BlockSpec((tm, tn), lambda i, j, k: (i, j)),
            scratch_shapes=[pltpu.VMEM((tm, tn), jnp.float32)],
        ),
        compiler_params=_cparams(("parallel", "parallel", "arbitrary")),
    )(*operands)
    if (Mp, Np) != (M, N):
        out = out[:M, :N]
    return out


def conv1x1_bn_act(x, w_mat, scale, shift, act="none", stride=1, residual=None):
    """1x1 conv on NHWC as a plain matmul; residual add + ReLU fused in the epilogue."""
    if stride != 1:
        x = x[:, ::stride, ::stride, :]
    B, H, W, Cin = x.shape
    res2 = None if residual is None else residual.reshape(B * H * W, -1)
    y = matmul_bn_act(x.reshape(B * H * W, Cin), w_mat, scale, shift,
                      act=act, residual=res2)
    return y.reshape(B, H, W, -1)


def conv_im2col_bn_act(x, w_mat, scale, shift, *, kh, kw, stride, padding, act):
    """Fallback path (7x7 conv1, stride-2 3x3 convs): im2col patches in XLA, matmul in Pallas."""
    B, H, W, Cin = x.shape
    Ho = (H + 2 * padding - kh) // stride + 1
    Wo = (W + 2 * padding - kw) // stride + 1
    xp = jnp.pad(x, ((0, 0), (padding, padding), (padding, padding), (0, 0)))
    cols = []
    for dy in range(kh):
        for dx in range(kw):
            cols.append(xp[:, dy:dy + stride * (Ho - 1) + 1:stride,
                           dx:dx + stride * (Wo - 1) + 1:stride, :])
    patches = jnp.stack(cols, axis=3).reshape(B * Ho * Wo, kh * kw * Cin)
    y = matmul_bn_act(patches, w_mat, scale, shift, act=act)
    return y.reshape(B, Ho, Wo, -1)


# --------------------- direct 3x3 stride-1 conv (strip-tiled, no HBM im2col) ---------------------

def _conv3x3_kernel(x_ref, halo_ref, w_ref, scale_ref, shift_ref, o_ref,
                    slab_ref, acc_ref, *, TH, Wq):
    m = TH * Wq
    # Assemble a contiguous padded slab in VMEM: TH main rows + 3 halo rows.
    slab_ref[pl.ds(0, m), :] = x_ref[0]
    slab_ref[pl.ds(m, 3 * Wq), :] = halo_ref[0, 0]
    acc_ref[...] = jnp.zeros_like(acc_ref)
    # 9 shifted matmuls accumulating into the VMEM f32 scratch.  Output flat row
    # g = h*Wq + w; tap (dy, dx) reads slab row g + dy*Wq + dx.  Columns >= Wo of each
    # output row are garbage (cross-row reads) and are dropped once in the wrapper.
    for dy in range(3):
        for dx in range(3):
            tap = slab_ref[pl.ds(dy * Wq + dx, m), :]
            acc_ref[...] += jnp.dot(tap, w_ref[dy * 3 + dx],
                                    preferred_element_type=jnp.float32)
    y = acc_ref[...] * scale_ref[...] + shift_ref[...]
    # Flat, unmasked, lane-dense store of the full (TH*Wq, Cout) block (no in-kernel slice).
    o_ref[0] = jnp.maximum(y, 0.0).astype(o_ref.dtype)


def _pick_strip_rows(Ho, Wq, cout):
    # Strip rows chosen so the f32 accumulator stays <= ~4 MiB; with double-buffered
    # input/output strips and the 9-tap weights this keeps the kernel well under the
    # 48 MiB VMEM limit on v5e/v6e/v7x.
    acc_budget = 4 * 1024 * 1024
    th = max(1, acc_budget // (Wq * cout * 4))
    return int(min(Ho, th, 64))


def conv3x3_s1_bn_relu(x, w_taps, scale, shift, strip_rows=None):
    """3x3 / stride 1 / pad 1 conv on NHWC (bf16) + folded BN + ReLU.
    Grid = (batch, row strips); per step only a (TH+3)-row padded strip is resident."""
    B, H, W, Cin = x.shape
    Cout = w_taps.shape[-1]
    Ho, Wo = H, W
    Wq = _round_up(W + 2, 8)                      # padded width rounded to sublane multiple
    TH = strip_rows if strip_rows is not None else _pick_strip_rows(Ho, Wq, Cout)
    TH = int(min(TH, Ho))
    n_strips = -(-Ho // TH)
    Ho_pad = n_strips * TH
    Hp = Ho_pad + 3                               # 1 top pad + bottom pad + halo slack
    xpad = jnp.pad(x, ((0, 0), (1, Hp - 1 - H), (1, Wq - 1 - W), (0, 0)))
    xflat = xpad.reshape(B, Hp * Wq, Cin)
    # 3 halo rows per strip (the rows just below the strip), tiny extra HBM (~3/TH).
    halo = jnp.stack([xpad[:, t * TH + TH: t * TH + TH + 3] for t in range(n_strips)],
                     axis=1).reshape(B, n_strips, 3 * Wq, Cin)

    out = pl.pallas_call(
        functools.partial(_conv3x3_kernel, TH=TH, Wq=Wq),
        out_shape=jax.ShapeDtypeStruct((B, Ho_pad * Wq, Cout), jnp.bfloat16),
        grid_spec=pltpu.PrefetchScalarGridSpec(
            num_scalar_prefetch=0,
            grid=(B, n_strips),
            in_specs=[
                pl.BlockSpec((1, TH * Wq, Cin), lambda b, t: (b, t, 0)),
                pl.BlockSpec((1, 1, 3 * Wq, Cin), lambda b, t: (b, t, 0, 0)),
                pl.BlockSpec((9, Cin, Cout), lambda b, t: (0, 0, 0)),
                pl.BlockSpec((1, Cout), lambda b, t: (0, 0)),
                pl.BlockSpec((1, Cout), lambda b, t: (0, 0)),
            ],
            out_specs=pl.BlockSpec((1, TH * Wq, Cout), lambda b, t: (b, t, 0)),
            scratch_shapes=[
                pltpu.VMEM(((TH + 3) * Wq, Cin), jnp.bfloat16),
                pltpu.VMEM((TH * Wq, Cout), jnp.float32),
            ],
        ),
        compiler_params=_cparams(("parallel", "parallel")),
    )(xflat, halo, w_taps, scale.reshape(1, -1), shift.reshape(1, -1))
    # Drop the row padding and the garbage columns once, outside the kernel.
    return out.reshape(B, Ho_pad, Wq, Cout)[:, :Ho, :Wo, :]


# ----------------------------- maxpool (fused XLA max-chain, no patch blow-up) -----------------------------

def maxpool_3x3_s2_p1(x):
    B, H, W, C = x.shape
    Ho = (H + 2 - 3) // 2 + 1
    Wo = (W + 2 - 3) // 2 + 1
    xp = jnp.pad(x, ((0, 0), (1, 1), (1, 1), (0, 0)), constant_values=-jnp.inf)
    out = None
    for dy in range(3):
        for dx in range(3):
            v = xp[:, dy:dy + 2 * (Ho - 1) + 1:2, dx:dx + 2 * (Wo - 1) + 1:2, :]
            out = v if out is None else jnp.maximum(out, v)
    return out


# ----------------------------- fused CAM / GAP / cams_feature head -----------------------------

def _head_kernel(feat_ref, w_ref, logits_ref, cams_ref, cf_ref, *, inv_hw):
    feat = feat_ref[0]                                        # (HW, C)  bf16
    w = w_ref[...]                                            # (ncls_pad, C) bf16
    # cam_lin[c, hw] = sum_k w[c, k] * feat[hw, k]  ->  lane dim = HW (lane-dense outputs)
    cam_lin = lax.dot_general(w, feat, (((1,), (1,)), ((), ())),
                              preferred_element_type=jnp.float32)   # (ncls_pad, HW) f32
    # logits: classifier(gap(feature)) == mean_hw(classifier(feature)) for a bias-free 1x1 conv
    logits_ref[0] = jnp.mean(cam_lin, axis=1, keepdims=True)        # (ncls_pad, 1)
    cams = jnp.maximum(cam_lin, 0.0)
    cam_max = jnp.max(cams, axis=1, keepdims=True)
    cams_n = cams / (cam_max + 1e-5)
    cams_ref[0] = cams_n
    # cams_feature[c, k] = mean_hw(cams_n[c, hw] * feat[hw, k])
    cf = jnp.dot(cams_n.astype(jnp.bfloat16), feat, preferred_element_type=jnp.float32)
    cf_ref[0] = cf * inv_hw


def cam_head(feature, w_cls):
    """feature: (B,H,W,2048) bf16.  w_cls: (n_classes, 2048) bf16 (unpadded)."""
    B, H, W, C = feature.shape
    HW = H * W
    ncls = w_cls.shape[0]
    ncls_pad = _round_up(ncls, 32)
    if ncls_pad != ncls:
        w_cls = jnp.pad(w_cls, ((0, ncls_pad - ncls), (0, 0)))
    feat = feature.reshape(B, HW, C)
    logits_p, cams_p, cf_p = pl.pallas_call(
        functools.partial(_head_kernel, inv_hw=1.0 / HW),
        out_shape=(jax.ShapeDtypeStruct((B, ncls_pad, 1), jnp.float32),
                   jax.ShapeDtypeStruct((B, ncls_pad, HW), jnp.float32),
                   jax.ShapeDtypeStruct((B, ncls_pad, C), jnp.float32)),
        grid_spec=pltpu.PrefetchScalarGridSpec(
            num_scalar_prefetch=0,
            grid=(B,),
            in_specs=[
                pl.BlockSpec((1, HW, C), lambda b: (b, 0, 0)),
                pl.BlockSpec((ncls_pad, C), lambda b: (0, 0)),
            ],
            out_specs=[
                pl.BlockSpec((1, ncls_pad, 1), lambda b: (b, 0, 0)),
                pl.BlockSpec((1, ncls_pad, HW), lambda b: (b, 0, 0)),
                pl.BlockSpec((1, ncls_pad, C), lambda b: (b, 0, 0)),
            ],
        ),
        compiler_params=_cparams(("parallel",)),
    )(feat, w_cls)
    logits = logits_p[:, :ncls, 0]
    cams = cams_p[:, :ncls].reshape(B, ncls, H, W)      # pure reshape, no transpose pass
    cams_feature = cf_p[:, :ncls]
    return logits, cams_feature, cams


# ----------------------------- parameters (raw PyTorch-like + one-time prepare) -----------------------------

_BN_EPS = 1e-5
# ResNet-50 with strides=(2,2,2,1): conv1 stride 2, layer strides (1,2,2,1),
# bottleneck counts (3,4,6,3), expansion 4 -> 2048 final channels.
LAYER_CFG = ((64, 3, 1), (128, 4, 2), (256, 6, 2), (512, 3, 1))


def _make_bn(c):
    return dict(gamma=jnp.ones((c,), jnp.float32), beta=jnp.zeros((c,), jnp.float32),
                mean=jnp.zeros((c,), jnp.float32), var=jnp.ones((c,), jnp.float32))


def _bn_fold(bn):
    scale = bn["gamma"] / jnp.sqrt(bn["var"] + _BN_EPS)
    shift = bn["beta"] - bn["mean"] * scale
    return scale, shift


def _he_normal(key, shape):  # OIHW
    fan_in = shape[1] * shape[2] * shape[3]
    std = (2.0 / fan_in) ** 0.5
    return std * jax.random.normal(key, shape, dtype=jnp.float32)


def make_params(key, n_classes=20):
    keys = iter(jax.random.split(key, 64))
    params = {"conv1": _he_normal(next(keys), (64, 3, 7, 7)), "bn1": _make_bn(64)}
    layers = []
    in_c = 64
    for planes, n_blocks, _ in LAYER_CFG:
        blocks = []
        for bi in range(n_blocks):
            kk = jax.random.split(next(keys), 4)
            p = {
                "conv1": _he_normal(kk[0], (planes, in_c, 1, 1)), "bn1": _make_bn(planes),
                "conv2": _he_normal(kk[1], (planes, planes, 3, 3)), "bn2": _make_bn(planes),
                "conv3": _he_normal(kk[2], (planes * 4, planes, 1, 1)),
                "bn3": _make_bn(planes * 4),
            }
            if bi == 0:
                p["downsample"] = _he_normal(kk[3], (planes * 4, in_c, 1, 1))
                p["bn_ds"] = _make_bn(planes * 4)
            blocks.append(p)
            in_c = planes * 4
        layers.append(blocks)
    params["layers"] = layers
    params["classifier"] = 0.01 * jax.random.normal(next(keys), (n_classes, in_c, 1, 1),
                                                    dtype=jnp.float32)
    return params


def _to_mat(w_oihw):   # OIHW -> (kh*kw*Cin, Cout) bf16 matmul layout
    o, i, kh, kw = w_oihw.shape
    return jnp.transpose(w_oihw, (2, 3, 1, 0)).reshape(kh * kw * i, o).astype(jnp.bfloat16)


def _to_taps(w_oihw):  # OIHW (3x3) -> (9, Cin, Cout) bf16 tap-major layout
    o, i, kh, kw = w_oihw.shape
    return jnp.transpose(w_oihw, (2, 3, 1, 0)).reshape(kh * kw, i, o).astype(jnp.bfloat16)


def prepare_params(params):
    """One-time weight layout conversion + BN folding (hoisted out of the forward)."""
    pp = {}
    pp["conv1_mat"] = _to_mat(params["conv1"])
    pp["s0"], pp["b0"] = _bn_fold(params["bn1"])
    layers = []
    for li, blocks in enumerate(params["layers"]):
        lstride = LAYER_CFG[li][2]
        qblocks = []
        for bi, bp in enumerate(blocks):
            stride = lstride if bi == 0 else 1
            q = {"w1": _to_mat(bp["conv1"]), "w3": _to_mat(bp["conv3"])}
            q["s1"], q["b1"] = _bn_fold(bp["bn1"])
            q["s2"], q["b2"] = _bn_fold(bp["bn2"])
            q["s3"], q["b3"] = _bn_fold(bp["bn3"])
            if stride == 1:
                q["w2_taps"] = _to_taps(bp["conv2"])
            else:
                q["w2_mat"] = _to_mat(bp["conv2"])
            if "downsample" in bp:
                q["wd"] = _to_mat(bp["downsample"])
                q["sd"], q["bd"] = _bn_fold(bp["bn_ds"])
            qblocks.append(q)
        layers.append(qblocks)
    pp["layers"] = layers
    w_cls = params["classifier"]
    pp["classifier_mat"] = w_cls.reshape(w_cls.shape[0], w_cls.shape[1]).astype(jnp.bfloat16)
    return pp


# ----------------------------- ResNet-50 forward -----------------------------

def _bottleneck(x, q, stride):
    out = conv1x1_bn_act(x, q["w1"], q["s1"], q["b1"], act="relu")
    if stride == 1:
        out = conv3x3_s1_bn_relu(out, q["w2_taps"], q["s2"], q["b2"])
    else:
        # TODO(synk): replace this im2col path with a direct strided-tap conv kernel.
        out = conv_im2col_bn_act(out, q["w2_mat"], q["s2"], q["b2"],
                                 kh=3, kw=3, stride=stride, padding=1, act="relu")
    if "wd" in q:
        identity = conv1x1_bn_act(x, q["wd"], q["sd"], q["bd"], act="none", stride=stride)
    else:
        identity = x
    # conv3 + BN + residual add + ReLU fused into one matmul epilogue
    return conv1x1_bn_act(out, q["w3"], q["s3"], q["b3"], act="relu", residual=identity)


def net_cam_feature_forward(pp, x_nchw):
    """Matches Net_CAM_Feature.forward: returns (logits, cams_feature, cams)."""
    x = jnp.transpose(x_nchw.astype(jnp.float32), (0, 2, 3, 1)).astype(jnp.bfloat16)  # NCHW->NHWC
    x = conv_im2col_bn_act(x, pp["conv1_mat"], pp["s0"], pp["b0"],
                           kh=7, kw=7, stride=2, padding=3, act="relu")
    x = maxpool_3x3_s2_p1(x)
    for li, (_, n_blocks, lstride) in enumerate(LAYER_CFG):
        for bi in range(n_blocks):
            x = _bottleneck(x, pp["layers"][li][bi], lstride if bi == 0 else 1)
    logits, cams_feature, cams = cam_head(x, pp["classifier_mat"])
    return logits, cams_feature, cams


# ----------------------------- pure-JAX references for unit checks -----------------------------

def _conv3x3_reference(x, w_taps, scale, shift):
    B, H, W, Cin = x.shape
    xf = jnp.pad(x.astype(jnp.float32), ((0, 0), (1, 1), (1, 1), (0, 0)))
    wf = w_taps.astype(jnp.float32)
    acc = jnp.zeros((B, H, W, wf.shape[-1]), jnp.float32)
    for dy in range(3):
        for dx in range(3):
            acc = acc + jnp.einsum("bhwc,cd->bhwd", xf[:, dy:dy + H, dx:dx + W, :],
                                   wf[dy * 3 + dx])
    return jnp.maximum(acc * scale + shift, 0.0)


def _head_reference(feature, w_cls):
    B, H, W, C = feature.shape
    f = feature.astype(jnp.float32)
    w = w_cls.astype(jnp.float32)
    cam = jnp.einsum("bhwc,nc->bnhw", f, w)
    logits = jnp.mean(cam, axis=(2, 3))
    cams = jnp.maximum(cam, 0.0)
    cams = cams / (jnp.max(cams, axis=(2, 3), keepdims=True) + 1e-5)
    cf = jnp.einsum("bnhw,bhwc->bnc", cams, f) / (H * W)
    return logits, cf, cams


if __name__ == "__main__":
    key = jax.random.PRNGKey(0)
    pkey, xkey, ckey, wkey, fkey, gkey = jax.random.split(key, 6)
    n_classes = 20

    # --- unit check: strip-tiled direct 3x3 conv vs pure-JAX reference (forces 3 strips) ---
    cin, cout = 64, 128
    xt = (0.5 * jax.random.normal(ckey, (2, 13, 11, cin), jnp.float32)).astype(jnp.bfloat16)
    wt = (0.06 * jax.random.normal(wkey, (9, cin, cout), jnp.float32)).astype(jnp.bfloat16)
    sc = jnp.linspace(0.5, 1.5, cout, dtype=jnp.float32)
    sh = jnp.linspace(-0.1, 0.1, cout, dtype=jnp.float32)
    got = conv3x3_s1_bn_relu(xt, wt, sc, sh, strip_rows=5)
    want = _conv3x3_reference(xt, wt, sc, sh)
    assert bool(jnp.allclose(got.astype(jnp.float32), want, rtol=5e-2, atol=5e-2))

    # --- unit check: fused CAM / GAP / cams_feature head vs pure-JAX reference ---
    feat_t = (0.5 * jax.random.normal(fkey, (2, 4, 4, 2048), jnp.float32)).astype(jnp.bfloat16)
    wcls_t = (0.01 * jax.random.normal(gkey, (n_classes, 2048), jnp.float32)).astype(jnp.bfloat16)
    lg, cf, cm = cam_head(feat_t, wcls_t)
    lg_r, cf_r, cm_r = _head_reference(feat_t, wcls_t)
    assert bool(jnp.allclose(lg, lg_r, rtol=5e-2, atol=2e-2))
    assert bool(jnp.allclose(cm, cm_r, rtol=5e-2, atol=2e-2))
    assert bool(jnp.allclose(cf, cf_r, rtol=5e-2, atol=2e-2))

    # --- full Net_CAM_Feature forward ---
    raw_params = make_params(pkey, n_classes=n_classes)
    pp = prepare_params(raw_params)   # one-time layout/BN-fold prep, outside the jitted forward
    x = jax.random.normal(xkey, (2, 3, 64, 64), dtype=jnp.float32)  # small NCHW RGB batch
    fwd = jax.jit(net_cam_feature_forward)
    logits, cams_feature, cams = fwd(pp, x)
    jax.block_until_ready((logits, cams_feature, cams))
    assert logits.shape == (2, n_classes)                 # x.view(-1, n_classes)
    assert cams_feature.shape == (2, n_classes, 2048)     # mean over spatial of cams*feature
    assert cams.shape == (2, n_classes, 4, 4)             # normalized CAMs, NCHW
    assert bool(jnp.all(jnp.isfinite(logits)))
    assert bool(jnp.all(jnp.isfinite(cams)))
    assert bool(jnp.all(jnp.isfinite(cams_feature)))
    print("KERNEL_OK")
</pallas_src>

<mosaic_0001>
module attributes {stable_mosaic.version = 11 : i64} {
  func.func @_conv3x3_kernel(%arg0: i32, %arg1: i32, %arg2: memref<1x80x64xbf16, #tpu.memory_space<vmem>>, %arg3: memref<1x1x48x64xbf16, #tpu.memory_space<vmem>>, %arg4: memref<9x64x128xbf16, #tpu.memory_space<vmem>>, %arg5: memref<1x128xf32, #tpu.memory_space<vmem>>, %arg6: memref<1x128xf32, #tpu.memory_space<vmem>>, %arg7: memref<1x80x128xbf16, #tpu.memory_space<vmem>>, %arg8: memref<128x64xbf16, #tpu.memory_space<vmem>>, %arg9: memref<80x128xf32, #tpu.memory_space<vmem>>) attributes {dimension_semantics = [#tpu.dimension_semantics<parallel>, #tpu.dimension_semantics<parallel>], iteration_bounds = array<i64: 2, 3>, scalar_prefetch = 0 : i64, scratch_operands = 2 : i64, tpu.core_type = #tpu.core_type<tc>, window_params = [{transform_indices = @transform_0, window_bounds = array<i64: 1, 80, 64>}, {transform_indices = @transform_1, window_bounds = array<i64: 1, 1, 48, 64>}, {pipeline_mode = #tpu.pipeline_mode<synchronous>, transform_indices = @transform_2, window_bounds = array<i64: 9, 64, 128>}, {pipeline_mode = #tpu.pipeline_mode<synchronous>, transform_indices = @transform_3, window_bounds = array<i64: 1, 128>}, {pipeline_mode = #tpu.pipeline_mode<synchronous>, transform_indices = @transform_4, window_bounds = array<i64: 1, 128>}, {transform_indices = @transform_5, window_bounds = array<i64: 1, 80, 128>}]} {
    %c0 = arith.constant 0 : index
    %c0_0 = arith.constant 0 : index
    %c0_1 = arith.constant 0 : index
    %0 = vector.load %arg2[%c0, %c0_0, %c0_1] : memref<1x80x64xbf16, #tpu.memory_space<vmem>>, vector<1x80x64xbf16>
    %1 = vector.shape_cast %0 : vector<1x80x64xbf16> to vector<80x64xbf16>
    %c0_2 = arith.constant 0 : index
    %c0_3 = arith.constant 0 : index
    %2 = vector.load %arg8[%c0_2, %c0_3] : memref<128x64xbf16, #tpu.memory_space<vmem>>, vector<80x64xbf16>
    tpu.vector_store %arg8[%c0_2, %c0_3], %1 {strides = array<i32>} : memref<128x64xbf16, #tpu.memory_space<vmem>>, vector<80x64xbf16>,
    %c0_4 = arith.constant 0 : index
    %c0_5 = arith.constant 0 : index
    %c0_6 = arith.constant 0 : index
    %c0_7 = arith.constant 0 : index
    %3 = vector.load %arg3[%c0_4, %c0_5, %c0_6, %c0_7] : memref<1x1x48x64xbf16, #tpu.memory_space<vmem>>, vector<1x1x48x64xbf16>
    %4 = vector.shape_cast %3 : vector<1x1x48x64xbf16> to vector<48x64xbf16>
    %c80 = arith.constant 80 : index
    %c0_8 = arith.constant 0 : index
    %5 = vector.load %arg8[%c80, %c0_8] : memref<128x64xbf16, #tpu.memory_space<vmem>>, vector<48x64xbf16>
    tpu.vector_store %arg8[%c80, %c0_8], %4 {strides = array<i32>} : memref<128x64xbf16, #tpu.memory_space<vmem>>, vector<48x64xbf16>,
    %cst = arith.constant 0.000000e+00 : f32
    %6 = vector.broadcast %cst : f32 to vector<80x128xf32>
    %c0_9 = arith.constant 0 : index
    %c0_10 = arith.constant 0 : index
    %7 = vector.load %arg9[%c0_9, %c0_10] : memref<80x128xf32, #tpu.memory_space<vmem>>, vector<80x128xf32>
    tpu.vector_store %arg9[%c0_9, %c0_10], %6 {strides = array<i32>} : memref<80x128xf32, #tpu.memory_space<vmem>>, vector<80x128xf32>,
    %c0_11 = arith.constant 0 : index
    %c0_12 = arith.constant 0 : index
    %8 = vector.load %arg8[%c0_11, %c0_12] : memref<128x64xbf16, #tpu.memory_space<vmem>>, vector<80x64xbf16>
    %c0_13 = arith.constant 0 : index
    %c0_14 = arith.constant 0 : index
    %9 = vector.load %arg9[%c0_13, %c0_14] : memref<80x128xf32, #tpu.memory_space<vmem>>, vector<80x128xf32>
    %c0_15 = arith.constant 0 : index
    %c0_16 = arith.constant 0 : index
    %c0_17 = arith.constant 0 : index
    %10 = vector.load %arg4[%c0_15, %c0_16, %c0_17] : memref<9x64x128xbf16, #tpu.memory_space<vmem>>, vector<1x64x128xbf16>
    %11 = vector.shape_cast %10 : vector<1x64x128xbf16> to vector<64x128xbf16>
    %cst_18 = arith.constant dense<0.000000e+00> : vector<80x128xf32>
    %12 = tpu.matmul %8, %11, %cst_18 {dimension_numbers = #tpu.dot_dimension_numbers<[1], [0], [0], [1], [0, 0, 1, 1], [], []>} : vector<80x64xbf16>, vector<64x128xbf16>, vector<80x128xf32> -> vector<80x128xf32>
    %13 = arith.addf %9, %12 : vector<80x128xf32>
    %c0_19 = arith.constant 0 : index
    %c0_20 = arith.constant 0 : index
    %14 = vector.load %arg9[%c0_19, %c0_20] : memref<80x128xf32, #tpu.memory_space<vmem>>, vector<80x128xf32>
    tpu.vector_store %arg9[%c0_19, %c0_20], %13 {strides = array<i32>} : memref<80x128xf32, #tpu.memory_space<vmem>>, vector<80x128xf32>,
    %c1 = arith.constant 1 : index
    %c0_21 = arith.constant 0 : index
    %15 = vector.load %arg8[%c1, %c0_21] : memref<128x64xbf16, #tpu.memory_space<vmem>>, vector<80x64xbf16>
    %c0_22 = arith.constant 0 : index
    %c0_23 = arith.constant 0 : index
    %16 = vector.load %arg9[%c0_22, %c0_23] : memref<80x128xf32, #tpu.memory_space<vmem>>, vector<80x128xf32>
    %c1_24 = arith.constant 1 : index
    %c0_25 = arith.constant 0 : index
    %c0_26 = arith.constant 0 : index
    %17 = vector.load %arg4[%c1_24, %c0_25, %c0_26] : memref<9x64x128xbf16, #tpu.memory_space<vmem>>, vector<1x64x128xbf16>
    %18 = vector.shape_cast %17 : vector<1x64x128xbf16> to vector<64x128xbf16>
    %cst_27 = arith.constant dense<0.000000e+00> : vector<80x128xf32>
    %19 = tpu.matmul %15, %18, %cst_27 {dimension_numbers = #tpu.dot_dimension_numbers<[1], [0], [0], [1], [0, 0, 1, 1], [], []>} : vector<80x64xbf16>, vector<64x128xbf16>, vector<80x128xf32> -> vector<80x128xf32>
    %20 = arith.addf %16, %19 : vector<80x128xf32>
    %c0_28 = arith.constant 0 : index
    %c0_29 = arith.constant 0 : index
    %21 = vector.load %arg9[%c0_28, %c0_29] : memref<80x128xf32, #tpu.memory_space<vmem>>, vector<80x128xf32>
    tpu.vector_store %arg9[%c0_28, %c0_29], %20 {strides = array<i32>} : memref<80x128xf32, #tpu.memory_space<vmem>>, vector<80x128xf32>,
    %c2 = arith.constant 2 : index
    %c0_30 = arith.constant 0 : index
    %22 = vector.load %arg8[%c2, %c0_30] : memref<128x64xbf16, #tpu.memory_space<vmem>>, vector<80x64xbf16>
    %c0_31 = arith.constant 0 : index
    %c0_32 = arith.constant 0 : index
    %23 = vector.load %arg9[%c0_31, %c0_32] : memref<80x128xf32, #tpu.memory_space<vmem>>, vector<80x128xf32>
    %c2_33 = arith.constant 2 : index
    %c0_34 = arith.constant 0 : index
    %c0_35 = arith.constant 0 : index
    %24 = vector.load %arg4[%c2_33, %c0_34, %c0_35] : memref<9x64x128xbf16, #tpu.memory_space<vmem>>, vector<1x64x128xbf16>
    %25 = vector.shape_cast %24 : vector<1x64x128xbf16> to vector<64x128xbf16>
    %cst_36 = arith.constant dense<0.000000e+00> : vector<80x128xf32>
    %26 = tpu.matmul %22, %25, %cst_36 {dimension_numbers = #tpu.dot_dimension_numbers<[1], [0], [0], [1], [0, 0, 1, 1], [], []>} : vector<80x64xbf16>, vector<64x128xbf16>, vector<80x128xf32> -> vector<80x128xf32>
    %27 = arith.addf %23, %26 : vector<80x128xf32>
    %c0_37 = arith.constant 0 : index
    %c0_38 = arith.constant 0 : index
    %28 = vector.load %arg9[%c0_37, %c0_38] : memref<80x128xf32, #tpu.memory_space<vmem>>, vector<80x128xf32>
    tpu.vector_store %arg9[%c0_37, %c0_38], %27 {strides = array<i32>} : memref<80x128xf32, #tpu.memory_space<vmem>>, vector<80x128xf32>,
    %c16 = arith.constant 16 : index
    %c0_39 = arith.constant 0 : index
    %29 = vector.load %arg8[%c16, %c0_39] : memref<128x64xbf16, #tpu.memory_space<vmem>>, vector<80x64xbf16>
    %c0_40 = arith.constant 0 : index
    %c0_41 = arith.constant 0 : index
    %30 = vector.load %arg9[%c0_40, %c0_41] : memref<80x128xf32, #tpu.memory_space<vmem>>, vector<80x128xf32>
    %c3 = arith.constant 3 : index
    %c0_42 = arith.constant 0 : index
    %c0_43 = arith.constant 0 : index
    %31 = vector.load %arg4[%c3, %c0_42, %c0_43] : memref<9x64x128xbf16, #tpu.memory_space<vmem>>, vector<1x64x128xbf16>
    %32 = vector.shape_cast %31 : vector<1x64x128xbf16> to vector<64x128xbf16>
    %cst_44 = arith.constant dense<0.000000e+00> : vector<80x128xf32>
    %33 = tpu.matmul %29, %32, %cst_44 {dimension_numbers = #tpu.dot_dimension_numbers<[1], [0], [0], [1], [0, 0, 1, 1], [], []>} : vector<80x64xbf16>, vector<64x128xbf16>, vector<80x128xf32> -> vector<80x128xf32>
    %34 = arith.addf %30, %33 : vector<80x128xf32>
    %c0_45 = arith.constant 0 : index
    %c0_46 = arith.constant 0 : index
    %35 = vector.load %arg9[%c0_45, %c0_46] : memref<80x128xf32, #tpu.memory_space<vmem>>, vector<80x128xf32>
    tpu.vector_store %arg9[%c0_45, %c0_46], %34 {strides = array<i32>} : memref<80x128xf32, #tpu.memory_space<vmem>>, vector<80x128xf32>,
    %c17 = arith.constant 17 : index
    %c0_47 = arith.constant 0 : index
    %36 = vector.load %arg8[%c17, %c0_47] : memref<128x64xbf16, #tpu.memory_space<vmem>>, vector<80x64xbf16>
    %c0_48 = arith.constant 0 : index
    %c0_49 = arith.constant 0 : index
    %37 = vector.load %arg9[%c0_48, %c0_49] : memref<80x128xf32, #tpu.memory_space<vmem>>, vector<80x128xf32>
    %c4 = arith.constant 4 : index
    %c0_50 = arith.constant 0 : index
    %c0_51 = arith.constant 0 : index
    %38 = vector.load %arg4[%c4, %c0_50, %c0_51] : memref<9x64x128xbf16, #tpu.memory_space<vmem>>, vector<1x64x128xbf16>
    %39 = vector.shape_cast %38 : vector<1x64x128xbf16> to vector<64x128xbf16>
    %cst_52 = arith.constant dense<0.000000e+00> : vector<80x128xf32>
    %40 = tpu.matmul %36, %39, %cst_52 {dimension_numbers = #tpu.dot_dimension_numbers<[1], [0], [0], [1], [0, 0, 1, 1], [], []>} : vector<80x64xbf16>, vector<64x128xbf16>, vector<80x128xf32> -> vector<80x128xf32>
    %41 = arith.addf %37, %40 : vector<80x128xf32>
    %c0_53 = arith.constant 0 : index
    %c0_54 = arith.constant 0 : index
    %42 = vector.load %arg9[%c0_53, %c0_54] : memref<80x128xf32, #tpu.memory_space<vmem>>, vector<80x128xf32>
    tpu.vector_store %arg9[%c0_53, %c0_54], %41 {strides = array<i32>} : memref<80x128xf32, #tpu.memory_space<vmem>>, vector<80x128xf32>,
    %c18 = arith.constant 18 : index
    %c0_55 = arith.constant 0 : index
    %43 = vector.load %arg8[%c18, %c0_55] : memref<128x64xbf16, #tpu.memory_space<vmem>>, vector<80x64xbf16>
    %c0_56 = arith.constant 0 : index
    %c0_57 = arith.constant 0 : index
    %44 = vector.load %arg9[%c0_56, %c0_57] : memref<80x128xf32, #tpu.memory_space<vmem>>, vector<80x128xf32>
    %c5 = arith.constant 5 : index
    %c0_58 = arith.constant 0 : index
    %c0_59 = arith.constant 0 : index
    %45 = vector.load %arg4[%c5, %c0_58, %c0_59] : memref<9x64x128xbf16, #tpu.memory_space<vmem>>, vector<1x64x128xbf16>
    %46 = vector.shape_cast %45 : vector<1x64x128xbf16> to vector<64x128xbf16>
    %cst_60 = arith.constant dense<0.000000e+00> : vector<80x128xf32>
    %47 = tpu.matmul %43, %46, %cst_60 {dimension_numbers = #tpu.dot_dimension_numbers<[1], [0], [0], [1], [0, 0, 1, 1], [], []>} : vector<80x64xbf16>, vector<64x128xbf16>, vector<80x128xf32> -> vector<80x128xf32>
    %48 = arith.addf %44, %47 : vector<80x128xf32>
    %c0_61 = arith.constant 0 : index
    %c0_62 = arith.constant 0 : index
    %49 = vector.load %arg9[%c0_61, %c0_62] : memref<80x128xf32, #tpu.memory_space<vmem>>, vector<80x128xf32>
    tpu.vector_store %arg9[%c0_61, %c0_62], %48 {strides = array<i32>} : memref<80x128xf32, #tpu.memory_space<vmem>>, vector<80x128xf32>,
    %c32 = arith.constant 32 : index
    %c0_63 = arith.constant 0 : index
    %50 = vector.load %arg8[%c32, %c0_63] : memref<128x64xbf16, #tpu.memory_space<vmem>>, vector<80x64xbf16>
    %c0_64 = arith.constant 0 : index
    %c0_65 = arith.constant 0 : index
    %51 = vector.load %arg9[%c0_64, %c0_65] : memref<80x128xf32, #tpu.memory_space<vmem>>, vector<80x128xf32>
    %c6 = arith.constant 6 : index
    %c0_66 = arith.constant 0 : index
    %c0_67 = arith.constant 0 : index
    %52 = vector.load %arg4[%c6, %c0_66, %c0_67] : memref<9x64x128xbf16, #tpu.memory_space<vmem>>, vector<1x64x128xbf16>
    %53 = vector.shape_cast %52 : vector<1x64x128xbf16> to vector<64x128xbf16>
    %cst_68 = arith.constant dense<0.000000e+00> : vector<80x128xf32>
    %54 = tpu.matmul %50, %53, %cst_68 {dimension_numbers = #tpu.dot_dimension_numbers<[1], [0], [0], [1], [0, 0, 1, 1], [], []>} : vector<80x64xbf16>, vector<64x128xbf16>, vector<80x128xf32> -> vector<80x128xf32>
    %55 = arith.addf %51, %54 : vector<80x128xf32>
    %c0_69 = arith.constant 0 : index
    %c0_70 = arith.constant 0 : index
    %56 = vector.load %arg9[%c0_69, %c0_70] : memref<80x128xf32, #tpu.memory_space<vmem>>, vector<80x128xf32>
    tpu.vector_store %arg9[%c0_69, %c0_70], %55 {strides = array<i32>} : memref<80x128xf32, #tpu.memory_space<vmem>>, vector<80x128xf32>,
    %c33 = arith.constant 33 : index
    %c0_71 = arith.constant 0 : index
    %57 = vector.load %arg8[%c33, %c0_71] : memref<128x64xbf16, #tpu.memory_space<vmem>>, vector<80x64xbf16>
    %c0_72 = arith.constant 0 : index
    %c0_73 = arith.constant 0 : index
    %58 = vector.load %arg9[%c0_72, %c0_73] : memref<80x128xf32, #tpu.memory_space<vmem>>, vector<80x128xf32>
    %c7 = arith.constant 7 : index
    %c0_74 = arith.constant 0 : index
    %c0_75 = arith.constant 0 : index
    %59 = vector.load %arg4[%c7, %c0_74, %c0_75] : memref<9x64x128xbf16, #tpu.memory_space<vmem>>, vector<1x64x128xbf16>
    %60 = vector.shape_cast %59 : vector<1x64x128xbf16> to vector<64x128xbf16>
    %cst_76 = arith.constant dense<0.000000e+00> : vector<80x128xf32>
    %61 = tpu.matmul %57, %60, %cst_76 {dimension_numbers = #tpu.dot_dimension_numbers<[1], [0], [0], [1], [0, 0, 1, 1], [], []>} : vector<80x64xbf16>, vector<64x128xbf16>, vector<80x128xf32> -> vector<80x128xf32>
    %62 = arith.addf %58, %61 : vector<80x128xf32>
    %c0_77 = arith.constant 0 : index
    %c0_78 = arith.constant 0 : index
    %63 = vector.load %arg9[%c0_77, %c0_78] : memref<80x128xf32, #tpu.memory_space<vmem>>, vector<80x128xf32>
    tpu.vector_store %arg9[%c0_77, %c0_78], %62 {strides = array<i32>} : memref<80x128xf32, #tpu.memory_space<vmem>>, vector<80x128xf32>,
    %c34 = arith.constant 34 : index
    %c0_79 = arith.constant 0 : index
    %64 = vector.load %arg8[%c34, %c0_79] : memref<128x64xbf16, #tpu.memory_space<vmem>>, vector<80x64xbf16>
    %c0_80 = arith.constant 0 : index
    %c0_81 = arith.constant 0 : index
    %65 = vector.load %arg9[%c0_80, %c0_81] : memref<80x128xf32, #tpu.memory_space<vmem>>, vector<80x128xf32>
    %c8 = arith.constant 8 : index
    %c0_82 = arith.constant 0 : index
    %c0_83 = arith.constant 0 : index
    %66 = vector.load %arg4[%c8, %c0_82, %c0_83] : memref<9x64x128xbf16, #tpu.memory_space<vmem>>, vector<1x64x128xbf16>
    %67 = vector.shape_cast %66 : vector<1x64x128xbf16> to vector<64x128xbf16>
    %cst_84 = arith.constant dense<0.000000e+00> : vector<80x128xf32>
    %68 = tpu.matmul %64, %67, %cst_84 {dimension_numbers = #tpu.dot_dimension_numbers<[1], [0], [0], [1], [0, 0, 1, 1], [], []>} : vector<80x64xbf16>, vector<64x128xbf16>, vector<80x128xf32> -> vector<80x128xf32>
    %69 = arith.addf %65, %68 : vector<80x128xf32>
    %c0_85 = arith.constant 0 : index
    %c0_86 = arith.constant 0 : index
    %70 = vector.load %arg9[%c0_85, %c0_86] : memref<80x128xf32, #tpu.memory_space<vmem>>, vector<80x128xf32>
    tpu.vector_store %arg9[%c0_85, %c0_86], %69 {strides = array<i32>} : memref<80x128xf32, #tpu.memory_space<vmem>>, vector<80x128xf32>,
    %c0_87 = arith.constant 0 : index
    %c0_88 = arith.constant 0 : index
    %71 = vector.load %arg9[%c0_87, %c0_88] : memref<80x128xf32, #tpu.memory_space<vmem>>, vector<80x128xf32>
    %c0_89 = arith.constant 0 : index
    %c0_90 = arith.constant 0 : index
    %72 = vector.load %arg5[%c0_89, %c0_90] : memref<1x128xf32, #tpu.memory_space<vmem>>, vector<1x128xf32>
    %73 = vector.broadcast %72 : vector<1x128xf32> to vector<80x128xf32>
    %74 = arith.mulf %71, %73 : vector<80x128xf32>
    %c0_91 = arith.constant 0 : index
    %c0_92 = arith.constant 0 : index
    %75 = vector.load %arg6[%c0_91, %c0_92] : memref<1x128xf32, #tpu.memory_space<vmem>>, vector<1x128xf32>
    %76 = vector.broadcast %75 : vector<1x128xf32> to vector<80x128xf32>
    %77 = arith.addf %74, %76 : vector<80x128xf32>
    %cst_93 = arith.constant 0.000000e+00 : f32
    %78 = vector.broadcast %cst_93 : f32 to vector<80x128xf32>
    %79 = arith.maximumf %77, %78 : vector<80x128xf32>
    %80 = arith.truncf %79 : vector<80x128xf32> to vector<80x128xbf16>
    %c0_94 = arith.constant 0 : index
    %c0_95 = arith.constant 0 : index
    %c0_96 = arith.constant 0 : index
    %81 = vector.load %arg7[%c0_94, %c0_95, %c0_96] : memref<1x80x128xbf16, #tpu.memory_space<vmem>>, vector<1x80x128xbf16>
    %82 = vector.shape_cast %81 : vector<1x80x128xbf16> to vector<80x128xbf16>
    %83 = vector.shape_cast %80 : vector<80x128xbf16> to vector<1x80x128xbf16>
    tpu.vector_store %arg7[%c0_94, %c0_95, %c0_96], %83 {strides = array<i32>} : memref<1x80x128xbf16, #tpu.memory_space<vmem>>, vector<1x80x128xbf16>,
    return
  }
  func.func @transform_0(%arg0: i32, %arg1: i32) -> (i32, i32, i32) {
    %c0_i32 = arith.constant 0 : i32
    %c0_i32_0 = arith.constant 0 : i32
    return %arg0, %arg1, %c0_i32 : i32, i32, i32
  }
  func.func @transform_1(%arg0: i32, %arg1: i32) -> (i32, i32, i32, i32) {
    %c0_i32 = arith.constant 0 : i32
    %c0_i32_0 = arith.constant 0 : i32
    %c0_i32_1 = arith.constant 0 : i32
    return %arg0, %arg1, %c0_i32, %c0_i32_0 : i32, i32, i32, i32
  }
  func.func @transform_2(%arg0: i32, %arg1: i32) -> (i32, i32, i32) {
    %c0_i32 = arith.constant 0 : i32
    %c0_i32_0 = arith.constant 0 : i32
    %c0_i32_1 = arith.constant 0 : i32
    %c0_i32_2 = arith.constant 0 : i32
    return %c0_i32, %c0_i32_0, %c0_i32_1 : i32, i32, i32
  }
  func.func @transform_3(%arg0: i32, %arg1: i32) -> (i32, i32) {
    %c0_i32 = arith.constant 0 : i32
    %c0_i32_0 = arith.constant 0 : i32
    %c0_i32_1 = arith.constant 0 : i32
    return %c0_i32, %c0_i32_0 : i32, i32
  }
  func.func @transform_4(%arg0: i32, %arg1: i32) -> (i32, i32) {
    %c0_i32 = arith.constant 0 : i32
    %c0_i32_0 = arith.constant 0 : i32
    %c0_i32_1 = arith.constant 0 : i32
    return %c0_i32, %c0_i32_0 : i32, i32
  }
  func.func @transform_5(%arg0: i32, %arg1: i32) -> (i32, i32, i32) {
    %c0_i32 = arith.constant 0 : i32
    %c0_i32_0 = arith.constant 0 : i32
    return %arg0, %arg1, %c0_i32 : i32, i32, i32
  }
}

</mosaic_0001>

<bundles_post_ra>
// kernel: tpu_custom_call.1
= control target key start
LH: loop header
LB: loop body
LE: loop exit
PB: predicated region body
PF: predicated region fallthrough
CT: control target
= control target key end

     0   :  { %10 = vsyncpa [#allocation5], 0  ;;  %s3801_s0 = inlined_call_operand.vmem [shape: bf16[2,288,64], index: 0, kind: input, shape index: {}]   ;;  %s3802_s1 = inlined_call_operand.vmem [shape: bf16[2,3,48,64], index: 1, kind: input, shape index: {}]   ;;  %s3803_s2 = inlined_call_operand.vmem [shape: bf16[9,64,128], index: 2, kind: input, shape index: {}]   ;;  %s3804_s3 = inlined_call_operand.vmem [shape: f32[1,128], index: 3, kind: input, shape index: {}]   ;;  %s3805_s4 = inlined_call_operand.vmem [shape: f32[1,128], index: 4, kind: input, shape index: {}]   ;;  %s3806_s5 = inlined_call_operand.hbm [shape: bf16[2,240,128], index: 5, kind: output, shape index: {}]  }
   0x1   :  { %12 = vsyncpa [#allocation5 + $0x1], 0  ;;  %s3169_s18 = smov 0   ;;  %s3171_s19 = smov 0  }
   0x2   :  { %s3173_s20 = smov 0   ;;  %s3175_s21 = smov 0  }
   0x3   :  { %s3177_s22 = smov 0   ;;  %s3179_s23 = smov 0  }
   0x4   :  { %s3181_s24 = smov 0   ;;  %s3183_s25 = smov 0  }
   0x5 LB: > { %s2209_s26 = sadd.s32 4294967295, %s3132_s25   ;;  %s2210_s27 = sadd.s32 4294967294, %s3132_s25   ;;  %s3132_s25 = sphi %s3183_s25, %s18_s25   ;;  %s3128_s24 = sphi %s3181_s24, %s3815_s24   ;;  %s3124_s23 = sphi %s3179_s23, %s3814_s23   ;;  %s3120_s22 = sphi %s3177_s22, %s3813_s22   ;;  %s3116_s21 = sphi %s3175_s21, %s3812_s21   ;;  %s3112_s20 = sphi %s3173_s20, %s3811_s20   ;;  %s3108_s19 = sphi %s3171_s19, %s3810_s19   ;;  %s3104_s18 = sphi %s3169_s18, %s3809_s18  }
   0x6   : > { %s27_s28 = sadd.s32 1, %s3124_s23  ;;  %s30_s29 = sadd.s32 1, %s3128_s24 }
   0x7   : > { %p28_p0 = scmp.ge.s32.totalorder %s27_s28, 3  ;;  %p168_p1 = scmp.ne.s32.totalorder %s3112_s20, %s3108_s19 }
   0x8   : > { %p169_p2 = scmp.eq.s32.totalorder %s2209_s26, 5  ;;  %p174_p5 = scmp.ne.s32.totalorder %s3108_s19, %s3104_s18 }
   0x9   : > { %s3817_s28 = smov (%p28_p0, %s27_s28), 0  ;;  %s3819_s29 = smov (!%p28_p0, %s30_s29), %s3128_s24 }
   0xa   : > { %s154_s30 = ssub.s32 %s3124_s23, %s3817_s28  ;;  %p3220_p3 = por %p169_p2, %p168_p1 }
   0xb   : > { %p32_p4 = scmp.ge.s32.totalorder %s3819_s29, 2  ;;  %p175_p6 = scmp.eq.s32.totalorder %s2210_s27, 5 }
   0xc   : > { %p2213_p7 = scmp.ge.s32.totalorder %s3132_s25, 1  ;;  %p235_p9 = scmp.lt.s32.totalorder %s3132_s25, 7 }
   0xd   : > { %s3821_s29 = smov (%p32_p4, %s3819_s29), 0  ;;  %p3229_p8 = por %p175_p6, %p174_p5 }
   0xe   : > { %s153_s8 = ssub.s32 %s3128_s24, %s3821_s29  ;;  %s158_s9 = sadd.s32 1, %s3112_s20 }
   0xf   : > { %s155_s10 = sor.u32 %s154_s30, %s153_s8  ;;  %p236_p10 = pnand %p2213_p7, %p235_p9 }
  0x10   : > { %p156_p11 = scmp.eq.s32.totalorder %s155_s10, 0  ;;  %v2994_v0 = vld [vmem:[%s3803_s2] sm:$0xff] (!%p236_p10)   ;;  %v3134_v1 = vmov (!%p236_p10), 0.0   ;;  %v2995_v2 = vld [vmem:[%s3803_s2 + $0x8] sm:$0xff] (!%p236_p10)   ;;  %vm3135_vm0 = vmmov (!%p236_p10), 0   ;;  %s3251_s16 = smul.u32 (!%p236_p10), 10, %s3116_s21 }
  0x11   : > { %239 = sbr.rel (%p236_p10) target bundleno = 455 (0x1c7), region = 40  ;;  %2504 = vmatprep.subr.bf16.mxu1 (!%p236_p10), %v3134_v1  ;;  %2616 = vmatprep.subr.bf16.mxu0 (!%p236_p10), %v3134_v1  ;;  %v3257_v3 = vld [vmem:[%s3803_s2 + $0x80] sm:$0xff] (!%p236_p10)   ;;  %p285_p12 = scmp.lt.s32.totalorder (!%p236_p10), %s3120_s22, 1  ;;  %v3267_v4 = vld [vmem:[%s3803_s2 + $0x88] sm:$0xff] (!%p236_p10)   ;;  %v2996_v5 = vld [vmem:[%s3803_s2 + $0x10] sm:$0xff] (!%p236_p10)   ;;  %vm349_vm1 = vcmask (!%p236_p10), 523264  }
  0x12   : > { %s3238_s11 = scalar_select %p156_p11, %s3112_s20, %s158_s9  }
  0x13   : > { %2505 = vmatpush3.bf16.msra.mxu1 (!%p236_p10), %v2994_v0  ;;  %2512 = vmatprep.mubr.msk.bf16.mxu1 (!%p236_p10), %vm3135_vm0, %v3134_v1  ;;  %p287_p13 = scmp.lt.s32.totalorder (!%p236_p10), %s3251_s16, 35  ;;  %v2998_v6 = vld [vmem:[%s3803_s2 + $0x18] sm:$0xff] (!%p236_p10)   ;;  %v3286_v7 = vld [vmem:[%s3803_s2 + $0x90] sm:$0xff] (!%p236_p10)   ;;  %p300_p0 = scmp.lt.s32.totalorder (!%p236_p10), %s3116_s21, 2  ;;  %v3001_v13 = vld [vmem:[%s3803_s2 + $0x20] sm:$0xff] (!%p236_p10)   ;;  %vm780_vm3 = vcmask (!%p236_p10), 1046528  }
  0x14   : > { %2506 = vmatprep.subr.bf16.mxu1 (!%p236_p10), %v3134_v1  ;;  %2624 = vmatprep.mubr.msk.bf16.mxu0 (!%p236_p10), %vm3135_vm0, %v3134_v1  ;;  %v3296_v8 = vld [vmem:[%s3803_s2 + $0x98] sm:$0xff] (!%p236_p10)   ;;  %v3007_v18 = vld [vmem:[%s3803_s2 + $0x28] sm:$0xff] (!%p236_p10)   ;;  %vm572_vm2 = vsmask.f32 (!%p236_p10), 7424  ;;  %v3006_v25 = vld [vmem:[%s3803_s2 + $0xa0] sm:$0xff] (!%p236_p10)   ;;  %s277_s9 = sand.u32 (!%p236_p10), 1, %s3108_s19  }
  0x15   : > { %2617 = vmatpush3.bf16.msra.mxu0 (!%p236_p10), %v3257_v3  ;;  %v3011_v28 = vld [vmem:[%s3803_s2 + $0x30] sm:$0xff] (!%p236_p10)   ;;  %v3008_v34 = vld [vmem:[%s3803_s2 + $0xa8] sm:$0xff] (!%p236_p10)   ;;  %v3014_v37 = vld [vmem:[%s3803_s2 + $0x38] sm:$0xff] (!%p236_p10)   ;;  %s2914_s10 = smul.u32 (!%p236_p10), 40, %s277_s9 }
  0x16   : > { %2618 = vmatprep.subr.bf16.mxu0 (!%p236_p10), %v3134_v1  ;;  %v3010_v38 = vld [vmem:[%s3803_s2 + $0xb0] sm:$0xff] (!%p236_p10)   ;;  %v3012_v40 = vld [vmem:[%s3803_s2 + $0xb8] sm:$0xff] (!%p236_p10)   ;;  %v3013_v44 = vld [vmem:[%s3803_s2 + $0xc0] sm:$0xff] (!%p236_p10)  }
  0x17   : > { %2507 = vmatpush3.bf16.msra.mxu1 (!%p236_p10), %v2995_v2  ;;  %v3016_v51 = vld [vmem:[%s3803_s2 + $0xc8] sm:$0xff] (!%p236_p10)   ;;  %v3018_v59 = vld [vmem:[%s3803_s2 + $0xd0] sm:$0xff] (!%p236_p10)   ;;  %v3021_v2 = vld [vmem:[%s3803_s2 + $0xd8] sm:$0xff] (!%p236_p10)  }
  0x18   : > { %s3270_s8 = scalar_select %p285_p12, %s3120_s22, 1  ;;  %2508 = vmatprep.subr.bf16.mxu1 %v3134_v1 }
  0x19   : > { %s288_s12 = scalar_select %p287_p13, %s3251_s16, 35  ;;  %2619 = vmatpush3.bf16.msra.mxu0 %v3267_v4 }
  0x1a   : > { %s2915_s13 = smul.u32 36, %s3270_s8  ;;  %2620 = vmatprep.subr.bf16.mxu0 %v3134_v1  ;;  %s3823_s21 = smov (!%p300_p0, %s3116_s21), 2 }
  0x1b   : > { %2509 = vmatpush3.bf16.msra.mxu1 %v2996_v5 }
  0x1c   : > { %s290_s17 = sadd.s32 %s2915_s13, %s288_s12  ;;  %2510 = vmatprep.subr.bf16.mxu1 %v3134_v1  ;;  %s2917_s13 = smul.u32 18, %s3270_s8 }
  0x1d   : > { %s2214_s30 = sshll.u32 %s290_s17, 2  ;;  %2621 = vmatpush3.bf16.msra.mxu0 %v3286_v7  ;;  %s2916_s17 = smul.u32 6, %s3823_s21 }
  0x1e   : > { %s292_s14 = scalar_lea.vmem %s3801_s0, %s2214_s30  ;;  %2622 = vmatprep.subr.bf16.mxu0 %v3134_v1  ;;  %s2918_s12 = smul.u32 30, %s3120_s22 }
  0x1f   : > { %v3000_v9 = vld [vmem:[%s292_s14] sm:$0xff]   ;;  %2511 = vmatpush3.bf16.msra.mxu1 %v2998_v6  ;;  %v3004_v10 = vld [vmem:[%s292_s14 + $0x8] sm:$0xff]   ;;  %v3005_v11 = vld [vmem:[%s292_s14 + $0x10] sm:$0xff]   ;;  %s304_s30 = sadd.s32 %s2917_s13, %s2916_s17 }
  0x20   : > { %350 = vst.msk [vmem:[#allocation2] sm:$0xff] %vm349_vm1, %v3000_v9  ;;  %2532 = vmatprep.subr.bf16.mxu1 %v3134_v1  ;;  %351 = vst.msk [vmem:[#allocation2 + $0x8] sm:$0xff] %vm349_vm1, %v3004_v10  ;;  %v3009_v12 = vld [vmem:[%s292_s14 + $0x18] sm:$0xff]   ;;  %v3015_v15 = vld [vmem:[%s292_s14 + $0x20] sm:$0xff]   ;;  %s2215_s8 = sshll.u32 %s304_s30, 2  ;;  %s3715_s14 = scalar_lea.vmem [#allocation4], %s2914_s10 }
  0x21   : > { %352 = vst.msk [vmem:[#allocation2 + $0x10] sm:$0xff] %vm349_vm1, %v3005_v11  ;;  %2623 = vmatpush3.bf16.msra.mxu0 %v3296_v8  ;;  %353 = vst.msk [vmem:[#allocation2 + $0x18] sm:$0xff] %vm349_vm1, %v3009_v12  ;;  %s3336_s15 = scalar_lea.vmem %s3802_s1, %s2215_s8  ;;  %v3017_v10 = vld [vmem:[%s3803_s2 + $0x40] sm:$0xff]   ;;  %v3020_v12 = vld [vmem:[%s3803_s2 + $0x48] sm:$0xff]   ;;  %s2103_s13 = sadd.s32 %s2918_s12, %s3251_s16 }
  0x22   : > { %2644 = vmatprep.subr.bf16.mxu0 %v3134_v1  ;;  %354 = vst.msk [vmem:[#allocation2 + $0x20] sm:$0xff] %vm349_vm1, %v3015_v15  ;;  %v3019_v31 = vld [vmem:[%s3336_s15] sm:$0xff]   ;;  %v3022_v36 = vld [vmem:[%s3336_s15 + $0x8] sm:$0xff]   ;;  %v3037_v53 = vld [vmem:[%s3336_s15 + $0x10] sm:$0xff]   ;;  %s2381_s22 = sshll.u32 %s2103_s13, 6  ;;  %s2106_s17 = sshll.u32 %s3715_s14, 4  ;;  %s3744_s17 = int_to_ptr.vmem [resolvable:$true] %s2106_s17 }
  0x23   : > { %379 = vst.msk [vmem:[#allocation2 + $0x28] sm:$0xff] %vm349_vm1, %v3019_v31  ;;  %380 = vst.msk [vmem:[#allocation2 + $0x30] sm:$0xff] %vm349_vm1, %v3022_v36  ;;  %s3742_s30 = scalar_lea.hbm %s3806_s5, %s2381_s22  ;;  %s3749_s16 = scalar_lea.sflag [#allocation5], %s277_s9 }
  0x24   : > { %381 = vst.msk [vmem:[#allocation2 + $0x38] sm:$0xff] %vm349_vm1, %v3037_v53  ;;  %v3036_v53 = vld [vmem:[%s3803_s2 + $0x118] sm:$0xff]   ;;  %s3038_s8 = scalar_lea.vmem %s3744_s17, 640  ;;  %s3136_s15 = smov [#allocation4]  }
  0x25   : > { %p3039_p1 = scmp.ne.s32.totalorder %s3744_s17, %s3038_s8  ;;  %s3042_s21 = sshll.u32 %s3136_s15, 4  ;;  %s3043_s21 = int_to_ptr.vmem [resolvable:$false] %s3042_s21 }
  0x26   : > { %s3044_s10 = scalar_lea.vmem %s3043_s21, 1280  ;;  %p3045_p5 = scmp.lt.s32.totalorder %s3744_s17, %s3043_s21 }
  0x27   : > { %v3313_v14 = vld [vmem:[#allocation2] sm:$0xff]  ;;  %v3319_v16 = vld [vmem:[#allocation2 + $0x8] sm:$0xff]  ;;  %p3040_p2 = pnand %p3039_p1, %p3220_p3  ;;  %p3046_p6 = scmp.lt.s32.totalorder %s3044_s10, %s3038_s8 }
  0x28   : > { %2513 = vmatmul.mubr.msk.bf16.vlgmr.msra.gmra.mrb[0].mxu1 %vm349_vm1, %v3313_v14  ;;  %v3321_v17 = vld [vmem:[#allocation2 + $0x10] sm:$0xff]  ;;  %v1106_v19 = vshrl.u32 %v3319_v16, 16  ;;  %v1108_v20 = vshll.u32 %v3319_v16, 16  ;;  %v3331_v22 = vld [vmem:[#allocation2 + $0x18] sm:$0xff]  ;;  %v1281_v39 = vld [vmem:[#allocation2 + $0x8] sm:$0xfe] }
  0x29   : > { %2533 = vmatpush3.bf16.msra.mxu1 %v3001_v13  ;;  %2516 = vmatprep.mubr.msk.bf16.mxu1 %vm3135_vm0, %v3134_v1  ;;  %v1113_v21 = vshll.u32 %v3321_v17, 16  ;;  %v1121_v26 = vshll.u32 %v3331_v22, 16  ;;  %v1117_v27 = vshrl.u32 %v3321_v17, 16  ;;  %v1312_v41 = vrot.slane %v1281_v39, 1  ;;  %v3405_v45 = vld [vmem:[#allocation2 + $0x20] sm:$0xff]  ;;  %p3041_p4 = pneg %p3040_p2  ;;  %p3047_p7 = por %p3046_p6, %p3045_p5 }
  0x2a   : > { %2534 = vmatprep.subr.bf16.mxu1 %v3134_v1  ;;  %v3338_v23 = vrot.slane %v1108_v20, 1  ;;  %v3396_v42 = vrot.slane %v3321_v17, 1  ;;  %v754_v46 = vld [vmem:[#allocation2 + $0x28] sm:$0x1]  ;;  %v1317_v47 = vrot.slane %v3405_v45, 1  ;;  %v576_v49 = vshll.u32 %v3313_v14, 16 }
  0x2b   : > { %v1115_v24 = vrot.slane %v1113_v21, 1  ;;  %v3349_v30 = vrot.slane %v1121_v26, 1  ;;  %v790_v48 = vrot.slane %v754_v46, 1  ;;  %v1315_v50 = vrot.slane %v3331_v22, 1  ;;  %v1812_v54 = vld [vmem:[#allocation2 + $0x10] sm:$0xfe]  ;;  %p3048_p9 = pnand %p3047_p7, %p3041_p4 }
  0x2c   : > { %v1111_v29 = vor.u32 %v3338_v23, %v1106_v19  ;;  %v1314_v43 = vsel %vm780_vm3, %v1312_v41, %v3396_v42  ;;  %v1843_v55 = vrot.slane %v1812_v54, 1  ;;  %v574_v56 = vshrl.u32 %v3313_v14, 16  ;;  %v3438_v61 = vld [vmem:[#allocation2 + $0x28] sm:$0xff]  ;;  %v3446_v63 = vld [vmem:[#allocation2 + $0x30] sm:$0xff]  ;;  %v3025_v19 = vld [vmem:[%s3803_s2 + $0x58] sm:$0xff]  }
  0x2d   : > { %2535 = vmatpush3.bf16.msra.mxu1 %v3007_v18  ;;  %v1642_v32 = vor.u32 %v1117_v27, %v1115_v24  ;;  %v3421_v52 = vsel %vm780_vm3, %v1317_v47, %v790_v48  ;;  %v578_v57 = vrot.slane %v576_v49, 1  ;;  %v3429_v58 = vsel %vm780_vm3, %v3396_v42, %v1315_v50  ;;  %v3023_v14 = vld [vmem:[%s3803_s2 + $0x50] sm:$0xff]   ;;  %v552_v26 = vld [vmem:[#allocation2 + $0x28] sm:$0x1]  ;;  %v749_v36 = vld [vmem:[#allocation2] sm:$0xfe] }
  0x2e   : > { %2536 = vmatprep.subr.bf16.mxu1 %v3134_v1  ;;  %v3354_v33 = vsel %vm572_vm2, %v1111_v29, %v1115_v24  ;;  %v3435_v60 = vsel %vm780_vm3, %v1843_v55, %v1315_v50  ;;  %v1319_v0 = vrot.slane %v3438_v61, 1  ;;  %v1850_v5 = vrot.slane %v3446_v63, 1  ;;  %v1286_v15 = vld [vmem:[#allocation2 + $0x30] sm:$0x1]  ;;  %v3032_v48 = vld [vmem:[%s3803_s2 + $0x100] sm:$0xff]   ;;  %v3034_v49 = vld [vmem:[%s3803_s2 + $0x108] sm:$0xff]  }
  0x2f   : > { %2625 = vmatmul.mubr.msk.bf16.vlgmr.msra.gmra.mrb[0].mxu0 %vm349_vm1, %v3354_v33  ;;  %v3368_v35 = vsel %vm572_vm2, %v1642_v32, %v3349_v30  ;;  %v579_v62 = vor.u32 %v578_v57, %v574_v56  ;;  %v3467_v11 = vsel %vm780_vm3, %v1315_v50, %v1317_v47  ;;  %v1321_v18 = vrot.slane %v1286_v15, 1 }
  0x30   : > { %2517 = vmatmul.mubr.msk.bf16.gmra.mrb[4].mxu1 %vm349_vm1, %v3319_v16  ;;  %2645 = vmatpush3.bf16.msra.mxu0 %v3006_v25  ;;  %v3459_v6 = vsel %vm780_vm3, %v1319_v0, %v1850_v5  ;;  %v3482_v13 = vsel %vm780_vm3, %v1317_v47, %v1319_v0  ;;  %v1125_v20 = vshrl.u32 %v3331_v22, 16  ;;  %v605_v21 = vshll.u32 %v3405_v45, 16  ;;  %v3031_v47 = vld [vmem:[%s3803_s2 + $0x70] sm:$0xff]  }
  0x31   : > { %2520 = vmatprep.mubr.msk.bf16.mxu1 %vm3135_vm0, %v3134_v1  ;;  %2628 = vmatprep.mubr.msk.bf16.mxu0 %vm3135_vm0, %v3134_v1  ;;  %v584_v9 = vsel %vm572_vm2, %v579_v62, %v3338_v23  ;;  %v1322_v23 = vsel %vm780_vm3, %v1319_v0, %v1321_v18  ;;  %v613_v29 = vshll.u32 %v552_v26, 16  ;;  %v782_v39 = vrot.slane %v3319_v16, 1  ;;  %v3705_v18 = vld [vmem:[%s3805_s4] ss:$0 sm:$0xff] }
  0x32   : > { %2646 = vmatprep.subr.bf16.mxu0 %v3134_v1  ;;  %2537 = vmatpush3.bf16.msra.mxu1 %v3011_v28  ;;  %v1127_v24 = vor.u32 %v1125_v20, %v3349_v30  ;;  %v607_v25 = vrot.slane %v605_v21, 1  ;;  %v609_v28 = vshrl.u32 %v3405_v45, 16  ;;  %v3024_v30 = vld [vmem:[%s3803_s2 + $0xe0] sm:$0xff]   ;;  %v1660_v50 = vshll.u32 %v3438_v61, 16 }
  0x33   : > { %2538 = vmatprep.subr.bf16.mxu1 %v3134_v1  ;;  %v615_v32 = vrot.slane %v613_v29, 1  ;;  %v785_v46 = vsel %vm780_vm3, %v782_v39, %v3396_v42  ;;  %v3033_v42 = vld [vmem:[%s3803_s2 + $0x78] sm:$0xff]   ;;  %v1664_v54 = vshrl.u32 %v3438_v61, 16  ;;  %v1668_v55 = vshll.u32 %v3446_v63, 16 }
  0x34   : > { %2647 = vmatpush3.bf16.msra.mxu0 %v3008_v34  ;;  %v3513_v27 = vsel %vm572_vm2, %v1127_v24, %v607_v25  ;;  %v3525_v31 = vor.u32 %v609_v28, %v607_v25 }
  0x35   : > { %2648 = vmatprep.subr.bf16.mxu0 %v3134_v1  ;;  %v1670_v57 = vrot.slane %v1668_v55, 1 }
  0x36   : > { %2539 = vmatpush3.bf16.msra.mxu1 %v3014_v37  ;;  %v616_v34 = vsel %vm572_vm2, %v3525_v31, %v615_v32  ;;  %v3028_v37 = vld [vmem:[%s3803_s2 + $0xf0] sm:$0xff]  }
  0x37   : > { %2560 = vmatprep.subr.bf16.mxu1 %v3134_v1  ;;  %2629 = vmatmul.mubr.msk.bf16.gmra.mrb[4].mxu0 %vm349_vm1, %v3368_v35 }
  0x38   : > { %2521 = vmatmul.mubr.msk.bf16.gmra.mrb[8].mxu1 %vm349_vm1, %v3321_v17  ;;  %2649 = vmatpush3.bf16.msra.mxu0 %v3010_v38  ;;  %v781_v38 = vrot.slane %v749_v36, 1 }
  0x39   : > { %2524 = vmatprep.mubr.msk.bf16.mxu1 %vm3135_vm0, %v3134_v1  ;;  %2652 = vmatprep.mubr.msk.bf16.mxu0 %vm3135_vm0, %v3134_v1 }
  0x3a   : > { %2650 = vmatprep.subr.bf16.mxu0 %v3134_v1  ;;  %v783_v41 = vsel %vm780_vm3, %v781_v38, %v782_v39 }
  0x3c   : > { %2651 = vmatpush3.bf16.msra.mxu0 %v3012_v40  ;;  %v3030_v40 = vld [vmem:[%s3803_s2 + $0xf8] sm:$0xff]  }
  0x3d   : > { %2672 = vmatprep.subr.bf16.mxu0 %v3134_v1 }
  0x3f   : > { %2653 = vmatmul.mubr.msk.bf16.vlgmr.msra.gmra.mrb[0].mxu0 %vm349_vm1, %v1314_v43  ;;  %v3027_v43 = vld [vmem:[%s3803_s2 + $0x60] sm:$0xff]  }
  0x40   : > { %2525 = vmatmul.mubr.msk.bf16.gmra.mrb[12].mxu1 %vm349_vm1, %v3331_v22  ;;  %2673 = vmatpush3.bf16.msra.mxu0 %v3013_v44  ;;  %v3029_v44 = vld [vmem:[%s3803_s2 + $0x68] sm:$0xff]  }
  0x41   : > { %2528 = vmatprep.mubr.msk.bf16.mxu1 %vm3135_vm0, %v3134_v1  ;;  %2656 = vmatprep.mubr.msk.bf16.mxu0 %vm3135_vm0, %v3134_v1 }
  0x42   : > { %2674 = vmatprep.subr.bf16.mxu0 %v3134_v1 }
  0x44   : > { %2675 = vmatpush3.bf16.msra.mxu0 %v3016_v51  ;;  %v1662_v51 = vrot.slane %v1660_v50, 1 }
  0x45   : > { %2676 = vmatprep.subr.bf16.mxu0 %v3134_v1 }
  0x46   : > { %v1666_v56 = vor.u32 %v1664_v54, %v1662_v51 }
  0x47   : > { %2657 = vmatmul.mubr.msk.bf16.gmra.mrb[4].mxu0 %vm349_vm1, %v3429_v58 }
  0x48   : > { %2529 = vmatmul.mubr.msk.bf16.gmra.mrb[16].mxu1 %vm349_vm1, %v3405_v45  ;;  %2660 = vmatprep.mubr.msk.bf16.mxu0 %vm3135_vm0, %v3134_v1 }
  0x49   : > { %2540 = vmatprep.mubr.msk.bf16.mxu1 %vm3135_vm0, %v3134_v1  ;;  %2677 = vmatpush3.bf16.msra.mxu0 %v3018_v59  ;;  %v1671_v59 = vsel %vm572_vm2, %v1666_v56, %v1670_v57 }
  0x4a   : > { %2678 = vmatprep.subr.bf16.mxu0 %v3134_v1 }
  0x4d   : > { %2679 = vmatpush3.bf16.msra.mxu0 %v3021_v2 }
  0x4e   : > { %2700 = vmatprep.subr.bf16.mxu0 %v3134_v1 }
  0x4f   : > { %2661 = vmatmul.mubr.msk.bf16.gmra.mrb[8].mxu0 %vm349_vm1, %v3467_v11 }
  0x50   : > { %2541 = vmatmul.mubr.msk.bf16.vlgmr.msra.gmra.mrb[0].mxu1 %vm349_vm1, %v584_v9  ;;  %2664 = vmatprep.mubr.msk.bf16.mxu0 %vm3135_vm0, %v3134_v1 }
  0x51   : > { %2561 = vmatpush3.bf16.msra.mxu1 %v3017_v10  ;;  %2544 = vmatprep.mubr.msk.bf16.mxu1 %vm3135_vm0, %v3134_v1 }
  0x52   : > { %2562 = vmatprep.subr.bf16.mxu1 %v3134_v1 }
  0x55   : > { %2563 = vmatpush3.bf16.msra.mxu1 %v3020_v12 }
  0x56   : > { %2564 = vmatprep.subr.bf16.mxu1 %v3134_v1 }
  0x57   : > { %2665 = vmatmul.mubr.msk.bf16.gmra.mrb[12].mxu0 %vm349_vm1, %v3482_v13 }
  0x58   : > { %2545 = vmatmul.mubr.msk.bf16.gmra.mrb[4].mxu1 %vm349_vm1, %v3354_v33  ;;  %2668 = vmatprep.mubr.msk.bf16.mxu0 %vm3135_vm0, %v3134_v1  ;;  %v3026_v33 = vld [vmem:[%s3803_s2 + $0xe8] sm:$0xff]  }
  0x59   : > { %2548 = vmatprep.mubr.msk.bf16.mxu1 %vm3135_vm0, %v3134_v1  ;;  %2565 = vmatpush3.bf16.msra.mxu1 %v3023_v14 }
  0x5a   : > { %2566 = vmatprep.subr.bf16.mxu1 %v3134_v1 }
  0x5d   : > { %2567 = vmatpush3.bf16.msra.mxu1 %v3025_v19 }
  0x5e   : > { %2588 = vmatprep.subr.bf16.mxu1 %v3134_v1 }
  0x5f   : > { %2669 = vmatmul.mubr.msk.bf16.gmra.mrb[16].mxu0 %vm349_vm1, %v1322_v23 }
  0x60   : > { %2549 = vmatmul.mubr.msk.bf16.gmra.mrb[8].mxu1 %vm349_vm1, %v3368_v35  ;;  %2680 = vmatprep.mubr.msk.bf16.mxu0 %vm3135_vm0, %v3134_v1 }
  0x61   : > { %2552 = vmatprep.mubr.msk.bf16.mxu1 %vm3135_vm0, %v3134_v1 }
  0x67   : > { %2681 = vmatmul.mubr.msk.bf16.vlgmr.msra.gmra.mrb[0].mxu0 %vm349_vm1, %v3321_v17 }
  0x68   : > { %2553 = vmatmul.mubr.msk.bf16.gmra.mrb[12].mxu1 %vm349_vm1, %v3513_v27  ;;  %2701 = vmatpush3.bf16.msra.mxu0 %v3024_v30 }
  0x69   : > { %2556 = vmatprep.mubr.msk.bf16.mxu1 %vm3135_vm0, %v3134_v1  ;;  %2684 = vmatprep.mubr.msk.bf16.mxu0 %vm3135_vm0, %v3134_v1 }
  0x6a   : > { %2702 = vmatprep.subr.bf16.mxu0 %v3134_v1 }
  0x6c   : > { %2703 = vmatpush3.bf16.msra.mxu0 %v3026_v33 }
  0x6d   : > { %2704 = vmatprep.subr.bf16.mxu0 %v3134_v1 }
  0x6f   : > { %2685 = vmatmul.mubr.msk.bf16.gmra.mrb[4].mxu0 %vm349_vm1, %v3331_v22 }
  0x70   : > { %2557 = vmatmul.mubr.msk.bf16.gmra.mrb[16].mxu1 %vm349_vm1, %v616_v34  ;;  %2688 = vmatprep.mubr.msk.bf16.mxu0 %vm3135_vm0, %v3134_v1 }
  0x71   : > { %2568 = vmatprep.mubr.msk.bf16.mxu1 %vm3135_vm0, %v3134_v1  ;;  %2705 = vmatpush3.bf16.msra.mxu0 %v3028_v37 }
  0x72   : > { %2706 = vmatprep.subr.bf16.mxu0 %v3134_v1 }
  0x75   : > { %2707 = vmatpush3.bf16.msra.mxu0 %v3030_v40 }
  0x76   : > { %2728 = vmatprep.subr.bf16.mxu0 %v3134_v1 }
  0x77   : > { %2689 = vmatmul.mubr.msk.bf16.gmra.mrb[8].mxu0 %vm349_vm1, %v3405_v45 }
  0x78   : > { %2569 = vmatmul.mubr.msk.bf16.vlgmr.msra.gmra.mrb[0].mxu1 %vm349_vm1, %v783_v41  ;;  %2692 = vmatprep.mubr.msk.bf16.mxu0 %vm3135_vm0, %v3134_v1 }
  0x79   : > { %2589 = vmatpush3.bf16.msra.mxu1 %v3027_v43  ;;  %2572 = vmatprep.mubr.msk.bf16.mxu1 %vm3135_vm0, %v3134_v1 }
  0x7a   : > { %2590 = vmatprep.subr.bf16.mxu1 %v3134_v1 }
  0x7d   : > { %2591 = vmatpush3.bf16.msra.mxu1 %v3029_v44 }
  0x7e   : > { %2592 = vmatprep.subr.bf16.mxu1 %v3134_v1 }
  0x7f   : > { %2693 = vmatmul.mubr.msk.bf16.gmra.mrb[12].mxu0 %vm349_vm1, %v3438_v61 }
  0x80   : > { %2573 = vmatmul.mubr.msk.bf16.gmra.mrb[4].mxu1 %vm349_vm1, %v785_v46  ;;  %2696 = vmatprep.mubr.msk.bf16.mxu0 %vm3135_vm0, %v3134_v1 }
  0x81   : > { %2576 = vmatprep.mubr.msk.bf16.mxu1 %vm3135_vm0, %v3134_v1  ;;  %2593 = vmatpush3.bf16.msra.mxu1 %v3031_v47 }
  0x82   : > { %2594 = vmatprep.subr.bf16.mxu1 %v3134_v1 }
  0x85   : > { %2595 = vmatpush3.bf16.msra.mxu1 %v3033_v42 }
  0x86   : > { %2756 = vmatprep.subr.bf16.mxu1 %v3134_v1 }
  0x87   : > { %2697 = vmatmul.mubr.msk.bf16.gmra.mrb[16].mxu0 %vm349_vm1, %v3446_v63 }
  0x88   : > { %2577 = vmatmul.mubr.msk.bf16.gmra.mrb[8].mxu1 %vm349_vm1, %v3429_v58  ;;  %2708 = vmatprep.mubr.msk.bf16.mxu0 %vm3135_vm0, %v3134_v1  ;;  %v1616_v58 = vld [vmem:[#allocation2 + $0x38] sm:$0x1] }
  0x89   : > { %2580 = vmatprep.mubr.msk.bf16.mxu1 %vm3135_vm0, %v3134_v1  ;;  %v1676_v62 = vshll.u32 %v1616_v58, 16 }
  0x8f   : > { %2709 = vmatmul.mubr.msk.bf16.vlgmr.msra.gmra.mrb[0].mxu0 %vm349_vm1, %v3368_v35  ;;  %v3035_v35 = vld [vmem:[%s3803_s2 + $0x110] sm:$0xff]  }
  0x90   : > { %2581 = vmatmul.mubr.msk.bf16.gmra.mrb[12].mxu1 %vm349_vm1, %v3467_v11  ;;  %2729 = vmatpush3.bf16.msra.mxu0 %v3032_v48 }
  0x91   : > { %2584 = vmatprep.mubr.msk.bf16.mxu1 %vm3135_vm0, %v3134_v1  ;;  %2712 = vmatprep.mubr.msk.bf16.mxu0 %vm3135_vm0, %v3134_v1 }
  0x92   : > { %2730 = vmatprep.subr.bf16.mxu0 %v3134_v1 }
  0x94   : > { %2731 = vmatpush3.bf16.msra.mxu0 %v3034_v49 }
  0x95   : > { %2732 = vmatprep.subr.bf16.mxu0 %v3134_v1 }
  0x97   : > { %2713 = vmatmul.mubr.msk.bf16.gmra.mrb[4].mxu0 %vm349_vm1, %v3513_v27 }
  0x98   : > { %2585 = vmatmul.mubr.msk.bf16.gmra.mrb[16].mxu1 %vm349_vm1, %v3421_v52  ;;  %2716 = vmatprep.mubr.msk.bf16.mxu0 %vm3135_vm0, %v3134_v1  ;;  %v1663_v52 = vsel %vm572_vm2, %v3525_v31, %v1662_v51 }
  0x99   : > { %2596 = vmatprep.mubr.msk.bf16.mxu1 %vm3135_vm0, %v3134_v1  ;;  %2733 = vmatpush3.bf16.msra.mxu0 %v3035_v35 }
  0x9a   : > { %2734 = vmatprep.subr.bf16.mxu0 %v3134_v1 }
  0x9d   : > { %2735 = vmatpush3.bf16.msra.mxu0 %v3036_v53 }
  0x9f   : > { %2717 = vmatmul.mubr.msk.bf16.gmra.mrb[8].mxu0 %vm349_vm1, %v1663_v52 }
  0xa0   : > { %2597 = vmatmul.mubr.msk.bf16.vlgmr.msra.gmra.mrb[0].mxu1 %vm349_vm1, %v3319_v16  ;;  %2720 = vmatprep.mubr.msk.bf16.mxu0 %vm3135_vm0, %v3134_v1  ;;  %v1672_v16 = vshrl.u32 %v3446_v63, 16  ;;  %v3700_v63 = vld [vmem:[%s3804_s3] ss:$0 sm:$0xff] }
  0xa1   : > { %2760 = vmatpush3.bf16.msra.mxu1 %v3257_v3  ;;  %2600 = vmatprep.mubr.msk.bf16.mxu1 %vm3135_vm0, %v3134_v1 }
  0xa2   : > { %2757 = vmatprep.subr.bf16.mxu1 %v3134_v1  ;;  %v1674_v3 = vor.u32 %v1672_v16, %v1670_v57 }
  0xa5   : > { %2761 = vmatpush3.bf16.msra.mxu1 %v3267_v4  ;;  %v1678_v4 = vrot.slane %v1676_v62, 1 }
  0xa6   : > { %2758 = vmatprep.subr.bf16.mxu1 %v3134_v1 }
  0xa7   : > { %2721 = vmatmul.mubr.msk.bf16.gmra.mrb[12].mxu0 %vm349_vm1, %v1671_v59  ;;  %v1679_v0 = vsel %vm572_vm2, %v1674_v3, %v1678_v4 }
  0xa8   : > { %2601 = vmatmul.mubr.msk.bf16.gmra.mrb[4].mxu1 %vm349_vm1, %v3321_v17  ;;  %2724 = vmatprep.mubr.msk.bf16.mxu0 %vm3135_vm0, %v3134_v1  ;;  %v1817_v17 = vld [vmem:[#allocation2 + $0x38] sm:$0x1] }
  0xa9   : > { %2604 = vmatprep.mubr.msk.bf16.mxu1 %vm3135_vm0, %v3134_v1  ;;  %2762 = vmatpush3.bf16.msra.mxu1 %v3286_v7  ;;  %v1085_v7 = vld [vmem:[#allocation2 + $0x30] sm:$0x1] }
  0xaa   : > { %2759 = vmatprep.subr.bf16.mxu1 %v3134_v1 }
  0xad   : > { %2763 = vmatpush3.bf16.msra.mxu1 %v3296_v8  ;;  %v1145_v8 = vshll.u32 %v1085_v7, 16 }
  0xaf   : > { %2725 = vmatmul.mubr.msk.bf16.gmra.mrb[16].mxu0 %vm349_vm1, %v1679_v0 }
  0xb0   : > { %2605 = vmatmul.mubr.msk.bf16.gmra.mrb[8].mxu1 %vm349_vm1, %v3331_v22  ;;  %2736 = vmatprep.mubr.msk.bf16.mxu0 %vm3135_vm0, %v3134_v1  ;;  %v1147_v22 = vrot.slane %v1145_v8, 1 }
  0xb1   : > { %2608 = vmatprep.mubr.msk.bf16.mxu1 %vm3135_vm0, %v3134_v1 }
  0xb7   : > { %2737 = vmatmul.mubr.msk.bf16.vlgmr.msra.gmra.mrb[0].mxu0 %vm349_vm1, %v3435_v60  ;;  %v1148_v60 = vsel %vm572_vm2, %v1666_v56, %v1147_v22 }
  0xb8   : > { %2609 = vmatmul.mubr.msk.bf16.gmra.mrb[12].mxu1 %vm349_vm1, %v3405_v45  ;;  %2740 = vmatprep.mubr.msk.bf16.mxu0 %vm3135_vm0, %v3134_v1  ;;  %v1852_v45 = vrot.slane %v1817_v17, 1 }
  0xb9   : > { %2612 = vmatprep.mubr.msk.bf16.mxu1 %vm3135_vm0, %v3134_v1 }
  0xbf   : > { %2741 = vmatmul.mubr.msk.bf16.gmra.mrb[4].mxu0 %vm349_vm1, %v3467_v11 }
  0xc0   : > { %2613 = vmatmul.mubr.msk.bf16.gmra.mrb[16].mxu1 %vm349_vm1, %v3438_v61  ;;  %2744 = vmatprep.mubr.msk.bf16.mxu0 %vm3135_vm0, %v3134_v1  ;;  %v1853_v61 = vsel %vm780_vm3, %v1850_v5, %v1852_v45 }
  0xc1   : > { %2632 = vmatprep.mubr.msk.bf16.mxu1 %vm3135_vm0, %v3134_v1 }
  0xc7   : > { %2745 = vmatmul.mubr.msk.bf16.gmra.mrb[8].mxu0 %vm349_vm1, %v3482_v13 }
  0xc8   : > { %2633 = vmatmul.mubr.msk.bf16.vlgmr.msra.gmra.mrb[8].mxu1 %vm349_vm1, %v3513_v27  ;;  %2748 = vmatprep.mubr.msk.bf16.mxu0 %vm3135_vm0, %v3134_v1 }
  0xc9   : > { %2636 = vmatprep.mubr.msk.bf16.mxu1 %vm3135_vm0, %v3134_v1 }
  0xcf   : > { %2749 = vmatmul.mubr.msk.bf16.gmra.mrb[12].mxu0 %vm349_vm1, %v3459_v6 }
  0xd0   : > { %2637 = vmatmul.mubr.msk.bf16.gmra.mrb[12].mxu1 %vm349_vm1, %v1663_v52  ;;  %2752 = vmatprep.mubr.msk.bf16.mxu0 %vm3135_vm0, %v3134_v1 }
  0xd1   : > { %2640 = vmatprep.mubr.msk.bf16.mxu1 %vm3135_vm0, %v3134_v1 }
  0xd7   : > { %2753 = vmatmul.mubr.msk.bf16.gmra.mrb[16].mxu0 %vm349_vm1, %v1853_v61 }
  0xd8   : > { %2641 = vmatmul.mubr.msk.bf16.gmra.mrb[16].mxu1 %vm349_vm1, %v1148_v60 }
 0x173   : > { %v1021_v2 = vpop.f32.mrb[0].mxu1 }
 0x174   : > { %v2598_v6 = vpop.f32.mrb[1].mxu1 }
 0x175   : > { %v1024_v9 = vpop.f32.mrb[2].mxu1 }
 0x176   : > { %v2599_v10 = vpop.f32.mrb[3].mxu1 }
 0x17b   : > { %v1029_v11 = vpop.f32.mrb[4].mxu1 }
 0x17c   : > { %v2602_v12 = vpop.f32.mrb[5].mxu1 }
 0x17d   : > { %v1032_v1 = vpop.f32.mrb[6].mxu1 }
 0x17e   : > { %v2603_v13 = vpop.f32.mrb[7].mxu1 }
 0x18a   : > { %v1927_v14 = vpop.f32.mrb[0].mxu0 }
 0x18b   : > { %v2764_v5 = vadd.f32 %v1927_v14, %v1021_v2  ;;  %v2738_v15 = vpop.f32.mrb[1].mxu0 }
 0x18c   : > { %v1930_v19 = vpop.f32.mrb[2].mxu0 }
 0x18d   : > { %v2003_v20 = vmul.f32 %v2764_v5, %v3700_v63  ;;  %v2765_v21 = vadd.f32 %v1930_v19, %v1024_v9  ;;  %v2739_v23 = vpop.f32.mrb[3].mxu0 }
 0x18f   : > { %v2020_v24 = vadd.f32 %v3705_v18, %v2003_v20  ;;  %v2004_v25 = vmul.f32 %v2765_v21, %v3700_v63 }
 0x191   : > { %v2021_v26 = vadd.f32 %v3705_v18, %v2004_v25  ;;  %v2030_v28 = vmax.f32 %v2020_v24, 0.0 }
 0x192   : > { %v1935_v27 = vpop.f32.mrb[4].mxu0 }
 0x193   : > { %v2031_v29 = vmax.f32 %v2021_v26, 0.0  ;;  %v2766_v30 = vadd.f32 %v1935_v27, %v1029_v11  ;;  %v2742_v31 = vpop.f32.mrb[5].mxu0 }
 0x194   : > { %v1938_v32 = vpop.f32.mrb[6].mxu0 }
 0x195   : > { %v2397_v33 = vpack.c.bf16 %v2031_v29, %v2030_v28  ;;  %v2005_v34 = vmul.f32 %v2766_v30, %v3700_v63  ;;  %v2767_v36 = vadd.f32 %v1938_v32, %v1032_v1  ;;  %v2743_v37 = vpop.f32.mrb[7].mxu0 }
 0x197   : > { %2398 = vst [vmem:[%s3715_s14] sm:$0xff] %v2397_v33   ;;  %v2022_v38 = vadd.f32 %v3705_v18, %v2005_v34  ;;  %v2006_v39 = vmul.f32 %v2767_v36, %v3700_v63 }
 0x199   : > { %v2023_v40 = vadd.f32 %v3705_v18, %v2006_v39  ;;  %v2032_v46 = vmax.f32 %v2022_v38, 0.0 }
 0x19a   : > { %v1943_v43 = vpop.f32.mrb[8].mxu0 }
 0x19b   : > { %v1238_v41 = vpop.f32.mrb[8].mxu1  ;;  %v2033_v47 = vmax.f32 %v2023_v40, 0.0  ;;  %v2746_v48 = vpop.f32.mrb[9].mxu0 }
 0x19c   : > { %v2634_v44 = vpop.f32.mrb[9].mxu1  ;;  %v2768_v42 = vadd.f32 %v1943_v43, %v1238_v41  ;;  %v1946_v50 = vpop.f32.mrb[10].mxu0 }
 0x19d   : > { %v1241_v49 = vpop.f32.mrb[10].mxu1  ;;  %v2402_v51 = vpack.c.bf16 %v2033_v47, %v2032_v46  ;;  %v2747_v54 = vpop.f32.mrb[11].mxu0 }
 0x19e   : > { %v2635_v35 = vpop.f32.mrb[11].mxu1  ;;  %v2007_v53 = vmul.f32 %v2768_v42, %v3700_v63  ;;  %v2769_v52 = vadd.f32 %v1946_v50, %v1241_v49 }
 0x19f   : > { %2419 = vst [vmem:[%s3715_s14 + $0x8] sm:$0xff] %v2402_v51  }
 0x1a0   : > { %v2024_v55 = vadd.f32 %v3705_v18, %v2007_v53  ;;  %v2008_v56 = vmul.f32 %v2769_v52, %v3700_v63 }
 0x1a2   : > { %v2025_v57 = vadd.f32 %v3705_v18, %v2008_v56  ;;  %v1951_v59 = vpop.f32.mrb[12].mxu0  ;;  %v2034_v62 = vmax.f32 %v2024_v55, 0.0 }
 0x1a3   : > { %v1246_v58 = vpop.f32.mrb[12].mxu1  ;;  %v2750_v0 = vpop.f32.mrb[13].mxu0 }
 0x1a4   : > { %v2638_v16 = vpop.f32.mrb[13].mxu1  ;;  %v2035_v3 = vmax.f32 %v2025_v57, 0.0  ;;  %v2770_v4 = vadd.f32 %v1951_v59, %v1246_v58  ;;  %v1954_v8 = vpop.f32.mrb[14].mxu0 }
 0x1a5   : > { %v1249_v7 = vpop.f32.mrb[14].mxu1  ;;  %v2751_v61 = vpop.f32.mrb[15].mxu0 }
 0x1a6   : > { %v2639_v17 = vpop.f32.mrb[15].mxu1  ;;  %v2407_v22 = vpack.c.bf16 %v2035_v3, %v2034_v62  ;;  %v2009_v45 = vmul.f32 %v2770_v4, %v3700_v63  ;;  %v2771_v60 = vadd.f32 %v1954_v8, %v1249_v7 }
 0x1a8   : > { %2420 = vst [vmem:[%s3715_s14 + $0x10] sm:$0xff] %v2407_v22   ;;  %v2026_v2 = vadd.f32 %v3705_v18, %v2009_v45  ;;  %v2010_v6 = vmul.f32 %v2771_v60, %v3700_v63 }
 0x1aa   : > { %v2027_v9 = vadd.f32 %v3705_v18, %v2010_v6  ;;  %v1959_v11 = vpop.f32.mrb[16].mxu0  ;;  %v2036_v1 = vmax.f32 %v2026_v2, 0.0 }
 0x1ab   : > { %v1254_v10 = vpop.f32.mrb[16].mxu1  ;;  %v2754_v5 = vpop.f32.mrb[17].mxu0 }
 0x1ac   : > { %v2642_v12 = vpop.f32.mrb[17].mxu1  ;;  %v2037_v13 = vmax.f32 %v2027_v9, 0.0  ;;  %v2772_v14 = vadd.f32 %v1959_v11, %v1254_v10  ;;  %v1962_v19 = vpop.f32.mrb[18].mxu0 }
 0x1ad   : > { %v1257_v15 = vpop.f32.mrb[18].mxu1  ;;  %v2755_v25 = vpop.f32.mrb[19].mxu0 }
 0x1ae   : > { %v2643_v20 = vpop.f32.mrb[19].mxu1  ;;  %v2412_v21 = vpack.c.bf16 %v2037_v13, %v2036_v1  ;;  %v2011_v23 = vmul.f32 %v2772_v14, %v3700_v63  ;;  %v2773_v24 = vadd.f32 %v1962_v19, %v1257_v15 }
 0x1b0   : > { %2421 = vst [vmem:[%s3715_s14 + $0x18] sm:$0xff] %v2412_v21   ;;  %v2028_v26 = vadd.f32 %v3705_v18, %v2011_v23  ;;  %v2012_v27 = vmul.f32 %v2773_v24, %v3700_v63 }
 0x1b2   : > { %v2029_v28 = vadd.f32 %v3705_v18, %v2012_v27  ;;  %v2038_v29 = vmax.f32 %v2028_v26, 0.0 }
 0x1b4   : > { %v2039_v30 = vmax.f32 %v2029_v28, 0.0 }
 0x1b6   : > { %v2417_v31 = vpack.c.bf16 %v2039_v30, %v2038_v29 }
 0x1b8   : > { %2422 = vst [vmem:[%s3715_s14 + $0x20] sm:$0xff] %v2417_v31  }
 0x1b9   : > { %3051 = shalt.err (!%p3048_p9)
}
 0x1ba   : > { %s3052_s9 = scalar_lea.hbm %s3742_s30, 640  ;;  %s3056_s13 = scalar_lea.hbm %s3806_s5, 3840 }
 0x1bb   : > { %p3053_p10 = scmp.ne.s32.totalorder %s3742_s30, %s3052_s9  ;;  %p3057_p13 = scmp.lt.u32.totalorder %s3742_s30, %s3806_s5 }
 0x1bc   : > { %p3058_p0 = scmp.lt.u32.totalorder %s3056_s13, %s3052_s9  ;;  %p3060_p2 = scmp.lt.u32.totalorder %s3052_s9, %s3742_s30 }
 0x1bd   : > { %p3054_p11 = pnand %p3053_p10, %p3220_p3 }
 0x1be   : > { %p3059_p1 = por %p3058_p0, %p3057_p13 }
 0x1bf   : > { %p3055_p12 = pneg %p3054_p11 }
 0x1c0   : > { %p3061_p4 = por %p3060_p2, %p3059_p1 }
 0x1c2   : > { %p3062_p5 = pnand %p3061_p4, %p3055_p12 }
 0x1c4   : > { %3065 = shalt.err (!%p3062_p5)
}
 0x1c5   : > { %s3137_s27 = smov 64   ;;  %s3138_s8 = smov 4  }
 0x1c6   : > { %2919 = dma.vmem_to_hbm [thread:$0]  (%p3220_p3), %s3744_s17, 640, %s3742_s30, %s3749_s16, %s3137_s27, %s3137_s27, %s3138_s8  }
 0x1c7 PF: > { %p2925_p6 = scmp.ge.s32.totalorder %s3132_s25, 2  ;;  %s2121_s15 = sand.u32 1, %s3104_s18  }
 0x1c8   : > { %s2122_s21 = scalar_lea.sflag [#allocation5], %s2121_s15 }
 0x1c9   : > { %p2922_p7 = pnand %p2925_p6, %p3229_p8 }
 0x1cb   : > { %3099 = dma.done.wait (!%p2922_p7), %s2122_s21, 640  }
 0x1cc   : > { %3101 = vsyncadd (!%p2922_p7), %s2122_s21, 4294966656  ;;  %s18_s25 = sadd.s32 1, %s3132_s25   ;;  %s3809_s18 = smov %s3108_s19 }
 0x1cd   : > { %p15_p9 = scmp.ge.s32.totalorder %s18_s25, 8   ;;  %s3810_s19 = smov %s3112_s20 }
 0x1ce   : > { %s3811_s20 = smov %s3238_s11  ;;  %s3812_s21 = smov %s3124_s23 }
 0x1cf   : > { %s3813_s22 = smov %s3128_s24  ;;  %s3814_s23 = smov %s3817_s28 }
 0x1d0   : > { %s3815_s24 = smov %s3821_s29  ;;  %17 = sbr.rel (!%p15_p9) target bundleno = 5 (0x5), region = 86 }
 0x1d7   :  { %2127 = vsyncpa [#allocation5], 1 }
 0x1d8   :  { %2129 = vsyncpa [#allocation5 + $0x1], 1 }

</bundles_post_ra>
